<compile_context>
chip_gen: v7x
topology: tpu7x:2x2x1
jax: 0.10.0
libtpu: 0.0.40
codegen_flags: <defaults>
</compile_context>

<pallas_src>
import jax
import jax.numpy as jnp
from jax import lax
from jax.experimental import pallas as pl
from jax.experimental.pallas import tpu as pltpu


def bottleneck_kernel(x_ref,                      # (1, H, W, C) f32
                      s0_ref, t0_ref,             # (1, C) folded BN0 scale/shift
                      w1_ref, t1_ref,             # (C, M) bf16 (BN1 scale folded), (1, M) f32
                      w2_ref, t2_ref,             # (9M, M) bf16 (BN2 scale folded), (1, M) f32
                      w3_ref, b3_ref,             # (M, C) bf16, (1, C) f32
                      wse1_ref, bse1_ref,         # (C, Cr) bf16, (1, Cr) f32
                      wse2_ref, bse2_ref,         # (Cr, C) bf16, (1, C) f32
                      out_ref,                    # (1, H, W, C) f32
                      pad_ref,                    # VMEM scratch (H+2, W+2, M) bf16
                      cols_ref):                  # VMEM scratch (H, W, 9M) bf16
    _, H, W, C = x_ref.shape
    M = w1_ref.shape[1]
    HW = H * W
    bf16 = jnp.bfloat16

    # Zero only the 1-wide halo slabs of the padded conv2 scratch; the interior
    # is fully overwritten below.  Done every step so each grid step is fully
    # self-contained (safe under megacore "parallel" sharding of the batch axis).
    zrow = jnp.zeros((1, W + 2, M), dtype=bf16)
    zcol = jnp.zeros((H, 1, M), dtype=bf16)
    pad_ref[0:1, :, :] = zrow
    pad_ref[H + 1:H + 2, :, :] = zrow
    pad_ref[1:H + 1, 0:1, :] = zcol
    pad_ref[1:H + 1, W + 1:W + 2, :] = zcol

    x2d = x_ref[...].reshape(HW, C)                           # (HW, C) f32

    # norm0 + ReLU (folded inference BN)
    h = jnp.maximum(x2d * s0_ref[...] + t0_ref[...], 0.0)

    # conv1: 1x1 conv == channel matmul on the MXU (BN1 scale pre-folded into w1)
    h = jnp.dot(h.astype(bf16), w1_ref[...],
                preferred_element_type=jnp.float32)           # (HW, M)
    h = jnp.maximum(h + t1_ref[...], 0.0)

    # conv2: 3x3 same-padding conv as im2col + ONE (HW, 9M) x (9M, M) matmul.
    # Write bf16 activations into the pad interior, then 9 shifted stores
    # straight into the lane slots of the cols scratch (no concat).
    pad_ref[1:H + 1, 1:W + 1, :] = h.astype(bf16).reshape(H, W, M)
    for k in range(9):
        di, dj = k // 3, k % 3
        cols_ref[:, :, k * M:(k + 1) * M] = pad_ref[di:di + H, dj:dj + W, :]
    h = jnp.dot(cols_ref[...].reshape(HW, 9 * M), w2_ref[...],
                preferred_element_type=jnp.float32)           # (HW, M)
    h = jnp.maximum(h + t2_ref[...], 0.0)

    # conv3: 1x1 conv with bias
    y = jnp.dot(h.astype(bf16), w3_ref[...],
                preferred_element_type=jnp.float32) + b3_ref[...]   # (HW, C)

    # Squeeze-Excitation (this image): avgpool -> fc -> ReLU -> fc -> sigmoid -> scale
    s = jnp.mean(y, axis=0, keepdims=True)                    # (1, C)
    z = jnp.maximum(
        jnp.dot(s.astype(bf16), wse1_ref[...],
                preferred_element_type=jnp.float32) + bse1_ref[...], 0.0)   # (1, Cr)
    g = jax.nn.sigmoid(
        jnp.dot(z.astype(bf16), wse2_ref[...],
                preferred_element_type=jnp.float32) + bse2_ref[...])        # (1, C)

    # scale + residual add
    out_ref[...] = (y * g + x2d).reshape(1, H, W, C)


def bottleneck_forward(x_nhwc, p):
    """x_nhwc: (N, H, W, C) float32. p: dict of parameters (see __main__)."""
    N, H, W, C = x_nhwc.shape
    M = p["w1"].shape[1]
    Cr = p["wse1"].shape[1]
    bf16 = jnp.bfloat16

    # Host-side prep (free): fold BN1/BN2 scales into conv output columns,
    # reshape w2 to im2col layout, pre-cast all MXU operands to bf16.
    w1f = (p["w1"] * p["s1"][0][None, :]).astype(bf16)                       # (C, M)
    w2f = (p["w2"] * p["s2"][0][None, None, None, :]).reshape(9 * M, M).astype(bf16)
    w3 = p["w3"].astype(bf16)                                                # (M, C)
    wse1 = p["wse1"].astype(bf16)                                            # (C, Cr)
    wse2 = p["wse2"].astype(bf16)                                            # (Cr, C)

    def const_spec(shape):
        # Constant index_map -> block unchanged across grid steps -> stays VMEM-resident.
        return pl.BlockSpec(shape, lambda n, _nd=len(shape): (0,) * _nd)

    in_specs = [
        pl.BlockSpec((1, H, W, C), lambda n: (n, 0, 0, 0)),   # x, one image per step
        const_spec((1, C)), const_spec((1, C)),               # s0, t0
        const_spec((C, M)), const_spec((1, M)),               # w1 (folded), t1
        const_spec((9 * M, M)), const_spec((1, M)),           # w2 (folded, im2col), t2
        const_spec((M, C)), const_spec((1, C)),               # w3, b3
        const_spec((C, Cr)), const_spec((1, Cr)),             # wse1, bse1
        const_spec((Cr, C)), const_spec((1, C)),              # wse2, bse2
    ]
    out_spec = pl.BlockSpec((1, H, W, C), lambda n: (n, 0, 0, 0))

    return pl.pallas_call(
        bottleneck_kernel,
        out_shape=jax.ShapeDtypeStruct((N, H, W, C), jnp.float32),
        grid_spec=pltpu.PrefetchScalarGridSpec(
            num_scalar_prefetch=0,
            grid=(N,),
            in_specs=in_specs,
            out_specs=out_spec,
            scratch_shapes=[
                pltpu.VMEM((H + 2, W + 2, M), bf16),     # padded conv2 input (bf16)
                pltpu.VMEM((H, W, 9 * M), bf16),         # im2col columns (bf16)
            ],
        ),
        # Batch axis is parallel: independent per-image work -> megacore sharding
        # on v7x, no effect on single-TC v5e/v6e. Per-step VMEM footprint is a few
        # hundred KiB at these shapes, well under every generation's scoped limit.
        compiler_params=pltpu.CompilerParams(
            dimension_semantics=("parallel",)),
    )(x_nhwc,
      p["s0"], p["t0"], w1f, p["t1"], w2f, p["t2"],
      w3, p["b3"], wse1, p["bse1"], wse2, p["bse2"])


def reference_forward(x_nhwc, p):
    """Pure-JAX f32 reference with identical math (for a sanity check)."""
    def bn_relu(v, scale, shift):
        return jnp.maximum(v * scale + shift, 0.0)

    h = bn_relu(x_nhwc, p["s0"][0], p["t0"][0])
    h = jnp.einsum("nhwc,cm->nhwm", h, p["w1"])
    h = bn_relu(h, p["s1"][0], p["t1"][0])
    h = lax.conv_general_dilated(h, p["w2"], window_strides=(1, 1), padding="SAME",
                                 dimension_numbers=("NHWC", "HWIO", "NHWC"))
    h = bn_relu(h, p["s2"][0], p["t2"][0])
    y = jnp.einsum("nhwm,mc->nhwc", h, p["w3"]) + p["b3"][0]
    s = jnp.mean(y, axis=(1, 2), keepdims=True)
    z = jnp.maximum(jnp.einsum("nijc,cr->nijr", s, p["wse1"]) + p["bse1"][0], 0.0)
    g = jax.nn.sigmoid(jnp.einsum("nijr,rc->nijc", z, p["wse2"]) + p["bse2"][0])
    return y * g + x_nhwc


def fold_bn(gamma, beta, mean, var, eps=1e-5):
    scale = gamma / jnp.sqrt(var + eps)
    shift = beta - mean * scale
    return scale[None, :], shift[None, :]


if __name__ == "__main__":
    # Module hyper-params (small but TPU-friendly sizes).
    N, C, H, W = 2, 128, 8, 8          # batch, channels, spatial
    M = 32                             # mid_channels
    ratio = 1.0 / 16
    Cr = max(1, int(C * ratio))        # SE reduced channels

    key = jax.random.PRNGKey(0)
    ks = jax.random.split(key, 20)

    def make_bn(k, ch):
        k1, k2, k3, k4 = jax.random.split(k, 4)
        gamma = 1.0 + 0.1 * jax.random.normal(k1, (ch,), jnp.float32)
        beta = 0.1 * jax.random.normal(k2, (ch,), jnp.float32)
        mean = 0.1 * jax.random.normal(k3, (ch,), jnp.float32)
        var = 1.0 + 0.1 * jax.random.uniform(k4, (ch,), jnp.float32)
        return fold_bn(gamma, beta, mean, var)

    s0, t0 = make_bn(ks[1], C)
    s1, t1 = make_bn(ks[2], M)
    s2, t2 = make_bn(ks[3], M)

    params = {
        "s0": s0, "t0": t0,
        "w1": 0.05 * jax.random.normal(ks[4], (C, M), jnp.float32),
        "s1": s1, "t1": t1,
        "w2": 0.05 * jax.random.normal(ks[5], (3, 3, M, M), jnp.float32),
        "s2": s2, "t2": t2,
        "w3": 0.05 * jax.random.normal(ks[6], (M, C), jnp.float32),
        "b3": 0.05 * jax.random.normal(ks[7], (1, C), jnp.float32),
        "wse1": 0.1 * jax.random.normal(ks[8], (C, Cr), jnp.float32),
        "bse1": 0.1 * jax.random.normal(ks[9], (1, Cr), jnp.float32),
        "wse2": 0.1 * jax.random.normal(ks[10], (Cr, C), jnp.float32),
        "bse2": 0.1 * jax.random.normal(ks[11], (1, C), jnp.float32),
    }

    # PyTorch-style NCHW input, transposed to NHWC for the kernel.
    x_nchw = jax.random.normal(ks[12], (N, C, H, W), jnp.float32)
    x_nhwc = jnp.transpose(x_nchw, (0, 2, 3, 1))

    out = bottleneck_forward(x_nhwc, params)
    out = jax.block_until_ready(out)

    ref = reference_forward(x_nhwc, params)
    assert out.shape == (N, H, W, C)
    # bf16 MXU operands with f32 accumulation -> slightly looser tolerance vs f32 ref.
    assert jnp.allclose(out, ref, atol=2e-2, rtol=2e-2), float(jnp.max(jnp.abs(out - ref)))

    print("KERNEL_OK")
</pallas_src>

<mosaic_0001>
module attributes {stable_mosaic.version = 11 : i64} {
  func.func @bottleneck_kernel(%arg0: i32, %arg1: memref<1x8x8x128xf32, #tpu.memory_space<vmem>>, %arg2: memref<1x128xf32, #tpu.memory_space<vmem>>, %arg3: memref<1x128xf32, #tpu.memory_space<vmem>>, %arg4: memref<128x32xbf16, #tpu.memory_space<vmem>>, %arg5: memref<1x32xf32, #tpu.memory_space<vmem>>, %arg6: memref<288x32xbf16, #tpu.memory_space<vmem>>, %arg7: memref<1x32xf32, #tpu.memory_space<vmem>>, %arg8: memref<32x128xbf16, #tpu.memory_space<vmem>>, %arg9: memref<1x128xf32, #tpu.memory_space<vmem>>, %arg10: memref<128x8xbf16, #tpu.memory_space<vmem>>, %arg11: memref<1x8xf32, #tpu.memory_space<vmem>>, %arg12: memref<8x128xbf16, #tpu.memory_space<vmem>>, %arg13: memref<1x128xf32, #tpu.memory_space<vmem>>, %arg14: memref<1x8x8x128xf32, #tpu.memory_space<vmem>>, %arg15: memref<10x10x32xbf16, #tpu.memory_space<vmem>>, %arg16: memref<8x8x288xbf16, #tpu.memory_space<vmem>>) attributes {dimension_semantics = [#tpu.dimension_semantics<parallel>], iteration_bounds = array<i64: 2>, scalar_prefetch = 0 : i64, scratch_operands = 2 : i64, tpu.core_type = #tpu.core_type<tc>, window_params = [{transform_indices = @transform_0, window_bounds = array<i64: 1, 8, 8, 128>}, {pipeline_mode = #tpu.pipeline_mode<synchronous>, transform_indices = @transform_1, window_bounds = array<i64: 1, 128>}, {pipeline_mode = #tpu.pipeline_mode<synchronous>, transform_indices = @transform_2, window_bounds = array<i64: 1, 128>}, {pipeline_mode = #tpu.pipeline_mode<synchronous>, transform_indices = @transform_3, window_bounds = array<i64: 128, 32>}, {pipeline_mode = #tpu.pipeline_mode<synchronous>, transform_indices = @transform_4, window_bounds = array<i64: 1, 32>}, {pipeline_mode = #tpu.pipeline_mode<synchronous>, transform_indices = @transform_5, window_bounds = array<i64: 288, 32>}, {pipeline_mode = #tpu.pipeline_mode<synchronous>, transform_indices = @transform_6, window_bounds = array<i64: 1, 32>}, {pipeline_mode = #tpu.pipeline_mode<synchronous>, transform_indices = @transform_7, window_bounds = array<i64: 32, 128>}, {pipeline_mode = #tpu.pipeline_mode<synchronous>, transform_indices = @transform_8, window_bounds = array<i64: 1, 128>}, {pipeline_mode = #tpu.pipeline_mode<synchronous>, transform_indices = @transform_9, window_bounds = array<i64: 128, 8>}, {pipeline_mode = #tpu.pipeline_mode<synchronous>, transform_indices = @transform_10, window_bounds = array<i64: 1, 8>}, {pipeline_mode = #tpu.pipeline_mode<synchronous>, transform_indices = @transform_11, window_bounds = array<i64: 8, 128>}, {pipeline_mode = #tpu.pipeline_mode<synchronous>, transform_indices = @transform_12, window_bounds = array<i64: 1, 128>}, {transform_indices = @transform_13, window_bounds = array<i64: 1, 8, 8, 128>}]} {
    %cst = arith.constant 0.000000e+00 : bf16
    %0 = vector.broadcast %cst : bf16 to vector<1x10x32xbf16>
    %cst_0 = arith.constant 0.000000e+00 : bf16
    %1 = vector.broadcast %cst_0 : bf16 to vector<8x1x32xbf16>
    %c0 = arith.constant 0 : index
    %c0_1 = arith.constant 0 : index
    %c0_2 = arith.constant 0 : index
    %2 = vector.load %arg15[%c0, %c0_1, %c0_2] : memref<10x10x32xbf16, #tpu.memory_space<vmem>>, vector<1x10x32xbf16>
    tpu.vector_store %arg15[%c0, %c0_1, %c0_2], %0 {strides = array<i32>} : memref<10x10x32xbf16, #tpu.memory_space<vmem>>, vector<1x10x32xbf16>,
    %c9 = arith.constant 9 : index
    %c0_3 = arith.constant 0 : index
    %c0_4 = arith.constant 0 : index
    %3 = vector.load %arg15[%c9, %c0_3, %c0_4] : memref<10x10x32xbf16, #tpu.memory_space<vmem>>, vector<1x10x32xbf16>
    tpu.vector_store %arg15[%c9, %c0_3, %c0_4], %0 {strides = array<i32>} : memref<10x10x32xbf16, #tpu.memory_space<vmem>>, vector<1x10x32xbf16>,
    %c1 = arith.constant 1 : index
    %c0_5 = arith.constant 0 : index
    %c0_6 = arith.constant 0 : index
    %4 = vector.load %arg15[%c1, %c0_5, %c0_6] : memref<10x10x32xbf16, #tpu.memory_space<vmem>>, vector<8x1x32xbf16>
    tpu.vector_store %arg15[%c1, %c0_5, %c0_6], %1 {strides = array<i32>} : memref<10x10x32xbf16, #tpu.memory_space<vmem>>, vector<8x1x32xbf16>,
    %c1_7 = arith.constant 1 : index
    %c9_8 = arith.constant 9 : index
    %c0_9 = arith.constant 0 : index
    %5 = vector.load %arg15[%c1_7, %c9_8, %c0_9] : memref<10x10x32xbf16, #tpu.memory_space<vmem>>, vector<8x1x32xbf16>
    tpu.vector_store %arg15[%c1_7, %c9_8, %c0_9], %1 {strides = array<i32>} : memref<10x10x32xbf16, #tpu.memory_space<vmem>>, vector<8x1x32xbf16>,
    %c0_10 = arith.constant 0 : index
    %c0_11 = arith.constant 0 : index
    %c0_12 = arith.constant 0 : index
    %c0_13 = arith.constant 0 : index
    %6 = vector.load %arg1[%c0_10, %c0_11, %c0_12, %c0_13] : memref<1x8x8x128xf32, #tpu.memory_space<vmem>>, vector<1x8x8x128xf32>
    %7 = vector.shape_cast %6 : vector<1x8x8x128xf32> to vector<64x128xf32>
    %c0_14 = arith.constant 0 : index
    %c0_15 = arith.constant 0 : index
    %8 = vector.load %arg2[%c0_14, %c0_15] : memref<1x128xf32, #tpu.memory_space<vmem>>, vector<1x128xf32>
    %9 = vector.broadcast %8 : vector<1x128xf32> to vector<64x128xf32>
    %10 = arith.mulf %7, %9 : vector<64x128xf32>
    %c0_16 = arith.constant 0 : index
    %c0_17 = arith.constant 0 : index
    %11 = vector.load %arg3[%c0_16, %c0_17] : memref<1x128xf32, #tpu.memory_space<vmem>>, vector<1x128xf32>
    %12 = vector.broadcast %11 : vector<1x128xf32> to vector<64x128xf32>
    %13 = arith.addf %10, %12 : vector<64x128xf32>
    %cst_18 = arith.constant 0.000000e+00 : f32
    %14 = vector.broadcast %cst_18 : f32 to vector<64x128xf32>
    %15 = arith.maximumf %13, %14 : vector<64x128xf32>
    %16 = arith.truncf %15 : vector<64x128xf32> to vector<64x128xbf16>
    %c0_19 = arith.constant 0 : index
    %c0_20 = arith.constant 0 : index
    %17 = vector.load %arg4[%c0_19, %c0_20] : memref<128x32xbf16, #tpu.memory_space<vmem>>, vector<128x32xbf16>
    %cst_21 = arith.constant dense<0.000000e+00> : vector<64x32xf32>
    %18 = tpu.matmul %16, %17, %cst_21 {dimension_numbers = #tpu.dot_dimension_numbers<[1], [0], [0], [1], [0, 0, 1, 1], [], []>} : vector<64x128xbf16>, vector<128x32xbf16>, vector<64x32xf32> -> vector<64x32xf32>
    %c0_22 = arith.constant 0 : index
    %c0_23 = arith.constant 0 : index
    %19 = vector.load %arg5[%c0_22, %c0_23] : memref<1x32xf32, #tpu.memory_space<vmem>>, vector<1x32xf32>
    %20 = vector.broadcast %19 : vector<1x32xf32> to vector<64x32xf32>
    %21 = arith.addf %18, %20 : vector<64x32xf32>
    %cst_24 = arith.constant 0.000000e+00 : f32
    %22 = vector.broadcast %cst_24 : f32 to vector<64x32xf32>
    %23 = arith.maximumf %21, %22 : vector<64x32xf32>
    %24 = arith.truncf %23 : vector<64x32xf32> to vector<64x32xbf16>
    %25 = vector.shape_cast %24 : vector<64x32xbf16> to vector<8x8x32xbf16>
    %c1_25 = arith.constant 1 : index
    %c1_26 = arith.constant 1 : index
    %c0_27 = arith.constant 0 : index
    %26 = vector.load %arg15[%c1_25, %c1_26, %c0_27] : memref<10x10x32xbf16, #tpu.memory_space<vmem>>, vector<8x8x32xbf16>
    tpu.vector_store %arg15[%c1_25, %c1_26, %c0_27], %25 {strides = array<i32>} : memref<10x10x32xbf16, #tpu.memory_space<vmem>>, vector<8x8x32xbf16>,
    %c0_28 = arith.constant 0 : index
    %c0_29 = arith.constant 0 : index
    %c0_30 = arith.constant 0 : index
    %27 = vector.load %arg15[%c0_28, %c0_29, %c0_30] : memref<10x10x32xbf16, #tpu.memory_space<vmem>>, vector<8x8x32xbf16>
    %c0_31 = arith.constant 0 : index
    %c0_32 = arith.constant 0 : index
    %c0_33 = arith.constant 0 : index
    %28 = vector.load %arg16[%c0_31, %c0_32, %c0_33] : memref<8x8x288xbf16, #tpu.memory_space<vmem>>, vector<8x8x32xbf16>
    tpu.vector_store %arg16[%c0_31, %c0_32, %c0_33], %27 {strides = array<i32>} : memref<8x8x288xbf16, #tpu.memory_space<vmem>>, vector<8x8x32xbf16>,
    %c0_34 = arith.constant 0 : index
    %c1_35 = arith.constant 1 : index
    %c0_36 = arith.constant 0 : index
    %29 = vector.load %arg15[%c0_34, %c1_35, %c0_36] : memref<10x10x32xbf16, #tpu.memory_space<vmem>>, vector<8x8x32xbf16>
    %c0_37 = arith.constant 0 : index
    %c0_38 = arith.constant 0 : index
    %c32 = arith.constant 32 : index
    %30 = vector.load %arg16[%c0_37, %c0_38, %c32] : memref<8x8x288xbf16, #tpu.memory_space<vmem>>, vector<8x8x32xbf16>
    tpu.vector_store %arg16[%c0_37, %c0_38, %c32], %29 {strides = array<i32>} : memref<8x8x288xbf16, #tpu.memory_space<vmem>>, vector<8x8x32xbf16>,
    %c0_39 = arith.constant 0 : index
    %c2 = arith.constant 2 : index
    %c0_40 = arith.constant 0 : index
    %31 = vector.load %arg15[%c0_39, %c2, %c0_40] : memref<10x10x32xbf16, #tpu.memory_space<vmem>>, vector<8x8x32xbf16>
    %c0_41 = arith.constant 0 : index
    %c0_42 = arith.constant 0 : index
    %c64 = arith.constant 64 : index
    %32 = vector.load %arg16[%c0_41, %c0_42, %c64] : memref<8x8x288xbf16, #tpu.memory_space<vmem>>, vector<8x8x32xbf16>
    tpu.vector_store %arg16[%c0_41, %c0_42, %c64], %31 {strides = array<i32>} : memref<8x8x288xbf16, #tpu.memory_space<vmem>>, vector<8x8x32xbf16>,
    %c1_43 = arith.constant 1 : index
    %c0_44 = arith.constant 0 : index
    %c0_45 = arith.constant 0 : index
    %33 = vector.load %arg15[%c1_43, %c0_44, %c0_45] : memref<10x10x32xbf16, #tpu.memory_space<vmem>>, vector<8x8x32xbf16>
    %c0_46 = arith.constant 0 : index
    %c0_47 = arith.constant 0 : index
    %c96 = arith.constant 96 : index
    %34 = vector.load %arg16[%c0_46, %c0_47, %c96] : memref<8x8x288xbf16, #tpu.memory_space<vmem>>, vector<8x8x32xbf16>
    tpu.vector_store %arg16[%c0_46, %c0_47, %c96], %33 {strides = array<i32>} : memref<8x8x288xbf16, #tpu.memory_space<vmem>>, vector<8x8x32xbf16>,
    %c1_48 = arith.constant 1 : index
    %c1_49 = arith.constant 1 : index
    %c0_50 = arith.constant 0 : index
    %35 = vector.load %arg15[%c1_48, %c1_49, %c0_50] : memref<10x10x32xbf16, #tpu.memory_space<vmem>>, vector<8x8x32xbf16>
    %c0_51 = arith.constant 0 : index
    %c0_52 = arith.constant 0 : index
    %c128 = arith.constant 128 : index
    %36 = vector.load %arg16[%c0_51, %c0_52, %c128] : memref<8x8x288xbf16, #tpu.memory_space<vmem>>, vector<8x8x32xbf16>
    tpu.vector_store %arg16[%c0_51, %c0_52, %c128], %35 {strides = array<i32>} : memref<8x8x288xbf16, #tpu.memory_space<vmem>>, vector<8x8x32xbf16>,
    %c1_53 = arith.constant 1 : index
    %c2_54 = arith.constant 2 : index
    %c0_55 = arith.constant 0 : index
    %37 = vector.load %arg15[%c1_53, %c2_54, %c0_55] : memref<10x10x32xbf16, #tpu.memory_space<vmem>>, vector<8x8x32xbf16>
    %c0_56 = arith.constant 0 : index
    %c0_57 = arith.constant 0 : index
    %c160 = arith.constant 160 : index
    %38 = vector.load %arg16[%c0_56, %c0_57, %c160] : memref<8x8x288xbf16, #tpu.memory_space<vmem>>, vector<8x8x32xbf16>
    tpu.vector_store %arg16[%c0_56, %c0_57, %c160], %37 {strides = array<i32>} : memref<8x8x288xbf16, #tpu.memory_space<vmem>>, vector<8x8x32xbf16>,
    %c2_58 = arith.constant 2 : index
    %c0_59 = arith.constant 0 : index
    %c0_60 = arith.constant 0 : index
    %39 = vector.load %arg15[%c2_58, %c0_59, %c0_60] : memref<10x10x32xbf16, #tpu.memory_space<vmem>>, vector<8x8x32xbf16>
    %c0_61 = arith.constant 0 : index
    %c0_62 = arith.constant 0 : index
    %c192 = arith.constant 192 : index
    %40 = vector.load %arg16[%c0_61, %c0_62, %c192] : memref<8x8x288xbf16, #tpu.memory_space<vmem>>, vector<8x8x32xbf16>
    tpu.vector_store %arg16[%c0_61, %c0_62, %c192], %39 {strides = array<i32>} : memref<8x8x288xbf16, #tpu.memory_space<vmem>>, vector<8x8x32xbf16>,
    %c2_63 = arith.constant 2 : index
    %c1_64 = arith.constant 1 : index
    %c0_65 = arith.constant 0 : index
    %41 = vector.load %arg15[%c2_63, %c1_64, %c0_65] : memref<10x10x32xbf16, #tpu.memory_space<vmem>>, vector<8x8x32xbf16>
    %c0_66 = arith.constant 0 : index
    %c0_67 = arith.constant 0 : index
    %c224 = arith.constant 224 : index
    %42 = vector.load %arg16[%c0_66, %c0_67, %c224] : memref<8x8x288xbf16, #tpu.memory_space<vmem>>, vector<8x8x32xbf16>
    tpu.vector_store %arg16[%c0_66, %c0_67, %c224], %41 {strides = array<i32>} : memref<8x8x288xbf16, #tpu.memory_space<vmem>>, vector<8x8x32xbf16>,
    %c2_68 = arith.constant 2 : index
    %c2_69 = arith.constant 2 : index
    %c0_70 = arith.constant 0 : index
    %43 = vector.load %arg15[%c2_68, %c2_69, %c0_70] : memref<10x10x32xbf16, #tpu.memory_space<vmem>>, vector<8x8x32xbf16>
    %c0_71 = arith.constant 0 : index
    %c0_72 = arith.constant 0 : index
    %c256 = arith.constant 256 : index
    %44 = vector.load %arg16[%c0_71, %c0_72, %c256] : memref<8x8x288xbf16, #tpu.memory_space<vmem>>, vector<8x8x32xbf16>
    tpu.vector_store %arg16[%c0_71, %c0_72, %c256], %43 {strides = array<i32>} : memref<8x8x288xbf16, #tpu.memory_space<vmem>>, vector<8x8x32xbf16>,
    %c0_73 = arith.constant 0 : index
    %c0_74 = arith.constant 0 : index
    %c0_75 = arith.constant 0 : index
    %45 = vector.load %arg16[%c0_73, %c0_74, %c0_75] : memref<8x8x288xbf16, #tpu.memory_space<vmem>>, vector<8x8x288xbf16>
    %46 = vector.shape_cast %45 : vector<8x8x288xbf16> to vector<64x288xbf16>
    %c0_76 = arith.constant 0 : index
    %c0_77 = arith.constant 0 : index
    %47 = vector.load %arg6[%c0_76, %c0_77] : memref<288x32xbf16, #tpu.memory_space<vmem>>, vector<288x32xbf16>
    %cst_78 = arith.constant dense<0.000000e+00> : vector<64x32xf32>
    %48 = tpu.matmul %46, %47, %cst_78 {dimension_numbers = #tpu.dot_dimension_numbers<[1], [0], [0], [1], [0, 0, 1, 1], [], []>} : vector<64x288xbf16>, vector<288x32xbf16>, vector<64x32xf32> -> vector<64x32xf32>
    %c0_79 = arith.constant 0 : index
    %c0_80 = arith.constant 0 : index
    %49 = vector.load %arg7[%c0_79, %c0_80] : memref<1x32xf32, #tpu.memory_space<vmem>>, vector<1x32xf32>
    %50 = vector.broadcast %49 : vector<1x32xf32> to vector<64x32xf32>
    %51 = arith.addf %48, %50 : vector<64x32xf32>
    %cst_81 = arith.constant 0.000000e+00 : f32
    %52 = vector.broadcast %cst_81 : f32 to vector<64x32xf32>
    %53 = arith.maximumf %51, %52 : vector<64x32xf32>
    %54 = arith.truncf %53 : vector<64x32xf32> to vector<64x32xbf16>
    %c0_82 = arith.constant 0 : index
    %c0_83 = arith.constant 0 : index
    %55 = vector.load %arg8[%c0_82, %c0_83] : memref<32x128xbf16, #tpu.memory_space<vmem>>, vector<32x128xbf16>
    %cst_84 = arith.constant dense<0.000000e+00> : vector<64x128xf32>
    %56 = tpu.matmul %54, %55, %cst_84 {dimension_numbers = #tpu.dot_dimension_numbers<[1], [0], [0], [1], [0, 0, 1, 1], [], []>} : vector<64x32xbf16>, vector<32x128xbf16>, vector<64x128xf32> -> vector<64x128xf32>
    %c0_85 = arith.constant 0 : index
    %c0_86 = arith.constant 0 : index
    %57 = vector.load %arg9[%c0_85, %c0_86] : memref<1x128xf32, #tpu.memory_space<vmem>>, vector<1x128xf32>
    %58 = vector.broadcast %57 : vector<1x128xf32> to vector<64x128xf32>
    %59 = arith.addf %56, %58 : vector<64x128xf32>
    %cst_87 = arith.constant dense<0.000000e+00> : vector<128xf32>
    %60 = vector.multi_reduction <add>, %59, %cst_87 [0] : vector<64x128xf32> to vector<128xf32>
    %61 = vector.shape_cast %60 : vector<128xf32> to vector<1x128xf32>
    %cst_88 = arith.constant 6.400000e+01 : f32
    %62 = vector.broadcast %cst_88 : f32 to vector<1x128xf32>
    %63 = arith.divf %61, %62 : vector<1x128xf32>
    %64 = arith.truncf %63 : vector<1x128xf32> to vector<1x128xbf16>
    %c0_89 = arith.constant 0 : index
    %c0_90 = arith.constant 0 : index
    %65 = vector.load %arg10[%c0_89, %c0_90] : memref<128x8xbf16, #tpu.memory_space<vmem>>, vector<128x8xbf16>
    %cst_91 = arith.constant dense<0.000000e+00> : vector<1x8xf32>
    %66 = tpu.matmul %64, %65, %cst_91 {dimension_numbers = #tpu.dot_dimension_numbers<[1], [0], [0], [1], [0, 0, 1, 1], [], []>} : vector<1x128xbf16>, vector<128x8xbf16>, vector<1x8xf32> -> vector<1x8xf32>
    %c0_92 = arith.constant 0 : index
    %c0_93 = arith.constant 0 : index
    %67 = vector.load %arg11[%c0_92, %c0_93] : memref<1x8xf32, #tpu.memory_space<vmem>>, vector<1x8xf32>
    %68 = arith.addf %66, %67 : vector<1x8xf32>
    %cst_94 = arith.constant 0.000000e+00 : f32
    %69 = vector.broadcast %cst_94 : f32 to vector<1x8xf32>
    %70 = arith.maximumf %68, %69 : vector<1x8xf32>
    %71 = arith.truncf %70 : vector<1x8xf32> to vector<1x8xbf16>
    %c0_95 = arith.constant 0 : index
    %c0_96 = arith.constant 0 : index
    %72 = vector.load %arg12[%c0_95, %c0_96] : memref<8x128xbf16, #tpu.memory_space<vmem>>, vector<8x128xbf16>
    %cst_97 = arith.constant dense<0.000000e+00> : vector<1x128xf32>
    %73 = tpu.matmul %71, %72, %cst_97 {dimension_numbers = #tpu.dot_dimension_numbers<[1], [0], [0], [1], [0, 0, 1, 1], [], []>} : vector<1x8xbf16>, vector<8x128xbf16>, vector<1x128xf32> -> vector<1x128xf32>
    %c0_98 = arith.constant 0 : index
    %c0_99 = arith.constant 0 : index
    %74 = vector.load %arg13[%c0_98, %c0_99] : memref<1x128xf32, #tpu.memory_space<vmem>>, vector<1x128xf32>
    %75 = arith.addf %73, %74 : vector<1x128xf32>
    %76 = arith.negf %75 : vector<1x128xf32>
    %77 = math.exp %76 : vector<1x128xf32>
    %cst_100 = arith.constant 1.000000e+00 : f32
    %78 = vector.broadcast %cst_100 : f32 to vector<1x128xf32>
    %79 = arith.addf %78, %77 : vector<1x128xf32>
    %80 = arith.divf %78, %79 : vector<1x128xf32>
    %81 = vector.broadcast %80 : vector<1x128xf32> to vector<64x128xf32>
    %82 = arith.mulf %59, %81 : vector<64x128xf32>
    %83 = arith.addf %82, %7 : vector<64x128xf32>
    %84 = vector.shape_cast %83 : vector<64x128xf32> to vector<1x8x8x128xf32>
    %c0_101 = arith.constant 0 : index
    %c0_102 = arith.constant 0 : index
    %c0_103 = arith.constant 0 : index
    %c0_104 = arith.constant 0 : index
    %85 = vector.load %arg14[%c0_101, %c0_102, %c0_103, %c0_104] : memref<1x8x8x128xf32, #tpu.memory_space<vmem>>, vector<1x8x8x128xf32>
    tpu.vector_store %arg14[%c0_101, %c0_102, %c0_103, %c0_104], %84 {strides = array<i32>} : memref<1x8x8x128xf32, #tpu.memory_space<vmem>>, vector<1x8x8x128xf32>,
    return
  }
  func.func @transform_0(%arg0: i32) -> (i32, i32, i32, i32) {
    %c0_i32 = arith.constant 0 : i32
    %c0_i32_0 = arith.constant 0 : i32
    %c0_i32_1 = arith.constant 0 : i32
    %c0_i32_2 = arith.constant 0 : i32
    return %arg0, %c0_i32, %c0_i32_0, %c0_i32_1 : i32, i32, i32, i32
  }
  func.func @transform_1(%arg0: i32) -> (i32, i32) {
    %c0_i32 = arith.constant 0 : i32
    %c0_i32_0 = arith.constant 0 : i32
    %c0_i32_1 = arith.constant 0 : i32
    return %c0_i32, %c0_i32_0 : i32, i32
  }
  func.func @transform_2(%arg0: i32) -> (i32, i32) {
    %c0_i32 = arith.constant 0 : i32
    %c0_i32_0 = arith.constant 0 : i32
    %c0_i32_1 = arith.constant 0 : i32
    return %c0_i32, %c0_i32_0 : i32, i32
  }
  func.func @transform_3(%arg0: i32) -> (i32, i32) {
    %c0_i32 = arith.constant 0 : i32
    %c0_i32_0 = arith.constant 0 : i32
    %c0_i32_1 = arith.constant 0 : i32
    return %c0_i32, %c0_i32_0 : i32, i32
  }
  func.func @transform_4(%arg0: i32) -> (i32, i32) {
    %c0_i32 = arith.constant 0 : i32
    %c0_i32_0 = arith.constant 0 : i32
    %c0_i32_1 = arith.constant 0 : i32
    return %c0_i32, %c0_i32_0 : i32, i32
  }
  func.func @transform_5(%arg0: i32) -> (i32, i32) {
    %c0_i32 = arith.constant 0 : i32
    %c0_i32_0 = arith.constant 0 : i32
    %c0_i32_1 = arith.constant 0 : i32
    return %c0_i32, %c0_i32_0 : i32, i32
  }
  func.func @transform_6(%arg0: i32) -> (i32, i32) {
    %c0_i32 = arith.constant 0 : i32
    %c0_i32_0 = arith.constant 0 : i32
    %c0_i32_1 = arith.constant 0 : i32
    return %c0_i32, %c0_i32_0 : i32, i32
  }
  func.func @transform_7(%arg0: i32) -> (i32, i32) {
    %c0_i32 = arith.constant 0 : i32
    %c0_i32_0 = arith.constant 0 : i32
    %c0_i32_1 = arith.constant 0 : i32
    return %c0_i32, %c0_i32_0 : i32, i32
  }
  func.func @transform_8(%arg0: i32) -> (i32, i32) {
    %c0_i32 = arith.constant 0 : i32
    %c0_i32_0 = arith.constant 0 : i32
    %c0_i32_1 = arith.constant 0 : i32
    return %c0_i32, %c0_i32_0 : i32, i32
  }
  func.func @transform_9(%arg0: i32) -> (i32, i32) {
    %c0_i32 = arith.constant 0 : i32
    %c0_i32_0 = arith.constant 0 : i32
    %c0_i32_1 = arith.constant 0 : i32
    return %c0_i32, %c0_i32_0 : i32, i32
  }
  func.func @transform_10(%arg0: i32) -> (i32, i32) {
    %c0_i32 = arith.constant 0 : i32
    %c0_i32_0 = arith.constant 0 : i32
    %c0_i32_1 = arith.constant 0 : i32
    return %c0_i32, %c0_i32_0 : i32, i32
  }
  func.func @transform_11(%arg0: i32) -> (i32, i32) {
    %c0_i32 = arith.constant 0 : i32
    %c0_i32_0 = arith.constant 0 : i32
    %c0_i32_1 = arith.constant 0 : i32
    return %c0_i32, %c0_i32_0 : i32, i32
  }
  func.func @transform_12(%arg0: i32) -> (i32, i32) {
    %c0_i32 = arith.constant 0 : i32
    %c0_i32_0 = arith.constant 0 : i32
    %c0_i32_1 = arith.constant 0 : i32
    return %c0_i32, %c0_i32_0 : i32, i32
  }
  func.func @transform_13(%arg0: i32) -> (i32, i32, i32, i32) {
    %c0_i32 = arith.constant 0 : i32
    %c0_i32_0 = arith.constant 0 : i32
    %c0_i32_1 = arith.constant 0 : i32
    %c0_i32_2 = arith.constant 0 : i32
    return %arg0, %c0_i32, %c0_i32_0, %c0_i32_1 : i32, i32, i32, i32
  }
}

</mosaic_0001>

<bundles_post_ra>
// kernel: tpu_custom_call.1
= control target key start
LH: loop header
LB: loop body
LE: loop exit
PB: predicated region body
PF: predicated region fallthrough
CT: control target
= control target key end

     0   :  { %s3769_s0 = inlined_call_operand.vmem [shape: f32[2,8,8,128], index: 0, kind: input, shape index: {}]   ;;  %s3770_s1 = inlined_call_operand.vmem [shape: f32[1,128], index: 1, kind: input, shape index: {}]   ;;  %s3771_s2 = inlined_call_operand.vmem [shape: f32[1,128], index: 2, kind: input, shape index: {}]   ;;  %s3772_s3 = inlined_call_operand.vmem [shape: bf16[128,32], index: 3, kind: input, shape index: {}]   ;;  %s3773_s4 = inlined_call_operand.vmem [shape: f32[1,32], index: 4, kind: input, shape index: {}]   ;;  %s3774_s5 = inlined_call_operand.vmem [shape: bf16[288,32], index: 5, kind: input, shape index: {}]   ;;  %s3775_s6 = inlined_call_operand.vmem [shape: f32[1,32], index: 6, kind: input, shape index: {}]   ;;  %s3776_s7 = inlined_call_operand.vmem [shape: bf16[32,128], index: 7, kind: input, shape index: {}]   ;;  %s3777_s8 = inlined_call_operand.vmem [shape: f32[1,128], index: 8, kind: input, shape index: {}]   ;;  %s3778_s9 = inlined_call_operand.vmem [shape: bf16[128,8], index: 9, kind: input, shape index: {}]   ;;  %s3779_s10 = inlined_call_operand.vmem [shape: f32[1,8], index: 10, kind: input, shape index: {}]   ;;  %s3780_s11 = inlined_call_operand.vmem [shape: bf16[8,128], index: 11, kind: input, shape index: {}]   ;;  %s3781_s12 = inlined_call_operand.vmem [shape: f32[1,128], index: 12, kind: input, shape index: {}]   ;;  %s3782_s13 = inlined_call_operand.hbm [shape: f32[2,8,8,128], index: 13, kind: output, shape index: {}]  }
   0x1   :  { %3783 = sst [smem:[#allocation7_spill]] %s3769_s0 }
   0x2   :  { %3784 = sst [smem:[#allocation8_spill]] %s3770_s1 }
   0x3   :  { %18 = vsyncpa [#allocation5], 0 }
   0x4   :  { %20 = vsyncpa [#allocation5 + $0x1], 0  ;;  %s2991_s25 = smov 0   ;;  %s2993_s26 = smov 0  }
   0x5   :  { %s2995_s27 = smov 0   ;;  %s2997_s28 = smov 0  }
   0x6 LB: > { %s3012_s29 = sadd.s32 4294967295, %s2910_s28   ;;  %s2472_s30 = sadd.s32 4294967294, %s2910_s28   ;;  %s2910_s28 = sphi %s2997_s28, %s3802_s28   ;;  %s2906_s27 = sphi %s2995_s27, %s3801_s27   ;;  %s2902_s26 = sphi %s2993_s26, %s3800_s26   ;;  %s2898_s25 = sphi %s2991_s25, %s3799_s25  }
   0x7   : > { %s3016_s14 = sadd.s32 1, %s2910_s28   ;;  %s311_s15 = sadd.s32 1, %s2906_s27 }
   0x8   : > { %s308_s16 = ssub.s32 %s2910_s28, %s3016_s14  ;;  %p321_p0 = scmp.ne.s32.totalorder %s2906_s27, %s2902_s26 }
   0x9   : > { %p309_p1 = scmp.eq.s32.totalorder %s308_s16, 0  ;;  %p322_p2 = scmp.eq.s32.totalorder %s3012_s29, 1 }
   0xa   : > { %p327_p3 = scmp.ne.s32.totalorder %s2902_s26, %s2898_s25  ;;  %p328_p4 = scmp.eq.s32.totalorder %s2472_s30, 1 }
   0xb   : > { %s3027_s17 = scalar_select %p309_p1, %s2906_s27, %s311_s15  }
   0xc   : > { %p3029_p5 = por %p322_p2, %p321_p0  ;;  %p3033_p6 = por %p328_p4, %p327_p3 }
   0xd   : > { %p2475_p7 = scmp.ge.s32.totalorder %s2910_s28, 1  ;;  %p390_p8 = scmp.lt.s32.totalorder %s2910_s28, 3 }
   0xf   : > { %p391_p9 = pnand %p2475_p7, %p390_p8 }
  0x10   : > { %v2785_v0 = vld [vmem:[%s3772_s3] sm:$0xff] (!%p391_p9)   ;;  %p434_p10 = scmp.lt.s32.totalorder (!%p391_p9), %s3012_s29, 1  ;;  %v2786_v1 = vld [vmem:[%s3772_s3 + $0x8] sm:$0xff] (!%p391_p9)   ;;  %vm440_vm0 = vcmask (!%p391_p9), 257024   ;;  %v2787_v2 = vld [vmem:[%s3772_s3 + $0x10] sm:$0xff] (!%p391_p9)   ;;  %v2912_v3 = vmov (!%p391_p9), 0  }
  0x11   : > { %394 = sbr.rel (%p391_p9) target bundleno = 1447 (0x5a7), region = 72  ;;  %2664 = vmatprep.subr.bf16.mxu0 (!%p391_p9), %v2785_v0  ;;  %445 = vst.msk [vmem:[#allocation2 + $0x48] sm:$0xf] (!%p391_p9), %vm440_vm0, %v2912_v3  ;;  %441 = vst.msk [vmem:[#allocation2] sm:$0xf] (!%p391_p9), %vm440_vm0, %v2912_v3  ;;  %s3787_s0 = sld [smem:[#allocation7_spill]] (!%p391_p9) }
  0x12   : > { %2665 = vmatpush3.bf16.msra.mxu0 (!%p391_p9), %v2785_v0  ;;  %vm442_vm1 = vcmask (!%p391_p9), 253952   ;;  %v2788_v4 = vld [vmem:[%s3772_s3 + $0x18] sm:$0xff] (!%p391_p9)   ;;  %s3788_s1 = sld [smem:[#allocation8_spill]] (!%p391_p9)  ;;  %vm449_vm2 = vsmask.f32 (!%p391_p9), 256  ;;  %v2789_v17 = vld [vmem:[%s3772_s3 + $0x20] sm:$0xff] (!%p391_p9)  }
  0x13   : > { %2666 = vmatprep.subr.bf16.mxu0 (!%p391_p9), %v2786_v1  ;;  %443 = vst.msk [vmem:[#allocation2 + $0x4] sm:$0x1] (!%p391_p9), %vm442_vm1, %v2912_v3  ;;  %446 = vst.msk [vmem:[#allocation2 + $0x4c] sm:$0x1] (!%p391_p9), %vm442_vm1, %v2912_v3  ;;  %v2480_v10 = vld [vmem:[%s3771_s2] ss:$0 sm:$0xff] (!%p391_p9) }
  0x14   : > { %vm475_vm3 = vsmask.f32 (!%p391_p9), 7938  ;;  %vm3079_vm4 = vmand (!%p391_p9), %vm442_vm1, %vm449_vm2  ;;  %v457_v25 = vld [vmem:[#allocation2 + $0x18] sm:$0x1] (!%p391_p9)  ;;  %v483_v26 = vld [vmem:[#allocation2 + $0x1c] sm:$0x1] (!%p391_p9) }
  0x15   : > { %vm3085_vm5 = vmand (!%p391_p9), %vm442_vm1, %vm475_vm3  ;;  %v2790_v32 = vld [vmem:[%s3772_s3 + $0x28] sm:$0xff] (!%p391_p9)   ;;  %v458_v35 = vsel (!%p391_p9), %vm3079_vm4, 0, %v457_v25  ;;  %v2791_v40 = vld [vmem:[%s3772_s3 + $0x30] sm:$0xff] (!%p391_p9)   ;;  %vm1061_vm6 = vcmask (!%p391_p9), 1042432   ;;  %vm1062_vm7 = vcmask (!%p391_p9), 1046532   ;;  %s2913_s23 = smov (!%p391_p9), 64  }
  0x16   : > { %2667 = vmatpush3.bf16.msra.mxu0 (!%p391_p9), %v2786_v1  ;;  %459 = vst [vmem:[#allocation2 + $0x18] sm:$0x1] (!%p391_p9), %v458_v35  ;;  %v484_v39 = vsel (!%p391_p9), %vm3085_vm5, 0, %v483_v26  ;;  %v2792_v43 = vld [vmem:[%s3772_s3 + $0x38] sm:$0xff] (!%p391_p9)   ;;  %v451_v53 = vld [vmem:[#allocation2 + $0x8] sm:$0x1] (!%p391_p9)  ;;  %vm3120_vm8 = vmor (!%p391_p9), %vm1061_vm6, %vm1062_vm7 }
  0x17   : > { %2668 = vmatprep.subr.bf16.mxu0 (!%p391_p9), %v2787_v2  ;;  %485 = vst [vmem:[#allocation2 + $0x1c] sm:$0x1] (!%p391_p9), %v484_v39  ;;  %v477_v54 = vld [vmem:[#allocation2 + $0xc] sm:$0x1] (!%p391_p9)  ;;  %v452_v55 = vsel (!%p391_p9), %vm3079_vm4, 0, %v451_v53  ;;  %vm1020_vm12 = vcmask (!%p391_p9), 519424   ;;  %vm3170_vm13 = vmand (!%p391_p9), %vm440_vm0, %vm475_vm3 }
  0x18   : > { %s435_s24 = scalar_select %p434_p10, %s3012_s29, 1  ;;  %v2479_v7 = vld [vmem:[%s3788_s1] ss:$0 sm:$0xff]  ;;  %v478_v56 = vsel %vm3085_vm5, 0, %v477_v54  ;;  %v486_v58 = vld [vmem:[#allocation2 + $0x24] sm:$0x1] }
  0x19   : > { %v460_v57 = vld [vmem:[#allocation2 + $0x20] sm:$0x1]  ;;  %453 = vst [vmem:[#allocation2 + $0x8] sm:$0x1] %v452_v55  ;;  %479 = vst [vmem:[#allocation2 + $0xc] sm:$0x1] %v478_v56 }
  0x1a   : > { %s2579_s16 = sshll.u32 %s435_s24, 6  ;;  %2669 = vmatpush3.bf16.msra.mxu0 %v2787_v2  ;;  %v461_v59 = vsel %vm3079_vm4, 0, %v460_v57  ;;  %v487_v60 = vsel %vm3085_vm5, 0, %v486_v58  ;;  %v454_v61 = vld [vmem:[#allocation2 + $0x10] sm:$0x1]  ;;  %s2914_s24 = smov 32  }
  0x1b   : > { %s3055_s22 = scalar_lea.vmem %s3787_s0, %s2579_s16  ;;  %2670 = vmatprep.subr.bf16.mxu0 %v2788_v4  ;;  %v480_v62 = vld [vmem:[#allocation2 + $0x14] sm:$0x1]  ;;  %462 = vst [vmem:[#allocation2 + $0x20] sm:$0x1] %v461_v59  ;;  %488 = vst [vmem:[#allocation2 + $0x24] sm:$0x1] %v487_v60 }
  0x1c   : > { %v501_v5 = vld [vmem:[%s3055_s22] sm:$0xff]  ;;  %v502_v6 = vld [vmem:[%s3055_s22 + $0x8] sm:$0xff]  ;;  %v503_v11 = vld [vmem:[%s3055_s22 + $0x10] sm:$0xff]  ;;  %v455_v63 = vsel %vm3079_vm4, 0, %v454_v61  ;;  %v481_v0 = vsel %vm3085_vm5, 0, %v480_v62  ;;  %vm1120_vm14 = vcmask 781824  }
  0x1d   : > { %v516_v8 = vmul.f32 %v2479_v7, %v501_v5  ;;  %v517_v9 = vmul.f32 %v2479_v7, %v502_v6  ;;  %v504_v12 = vld [vmem:[%s3055_s22 + $0x18] sm:$0xff]  ;;  %v518_v13 = vmul.f32 %v2479_v7, %v503_v11  ;;  %v505_v15 = vld [vmem:[%s3055_s22 + $0x20] sm:$0xff]  ;;  %v506_v16 = vld [vmem:[%s3055_s22 + $0x28] sm:$0xff]  ;;  %456 = vst [vmem:[#allocation2 + $0x10] sm:$0x1] %v455_v63  ;;  %s2915_s15 = smov 96  }
  0x1e   : > { %v519_v14 = vmul.f32 %v2479_v7, %v504_v12  ;;  %v520_v20 = vmul.f32 %v2479_v7, %v505_v15  ;;  %v521_v21 = vmul.f32 %v2479_v7, %v506_v16  ;;  %2671 = vmatpush3.bf16.msra.mxu0 %v2788_v4  ;;  %v507_v41 = vld [vmem:[%s3055_s22 + $0x30] sm:$0xff]  ;;  %v508_v42 = vld [vmem:[%s3055_s22 + $0x38] sm:$0xff]  ;;  %482 = vst [vmem:[#allocation2 + $0x14] sm:$0x1] %v481_v0  ;;  %v865_v1 = vld [vmem:[#allocation2] sm:$0xf] }
  0x1f   : > { %v531_v18 = vadd.f32 %v2480_v10, %v516_v8  ;;  %v532_v19 = vadd.f32 %v2480_v10, %v517_v9  ;;  %v533_v23 = vadd.f32 %v2480_v10, %v518_v13  ;;  %2672 = vmatprep.subr.bf16.mxu0 %v2789_v17  ;;  %v522_v44 = vmul.f32 %v2479_v7, %v507_v41  ;;  %v463_v4 = vld [vmem:[#allocation2 + $0x28] sm:$0x1]  ;;  %v1029_v5 = vld [vmem:[#allocation2] sm:$0xe]  ;;  %v489_v9 = vld [vmem:[#allocation2 + $0x2c] sm:$0x1] }
  0x20   : > { %v534_v24 = vadd.f32 %v2480_v10, %v519_v14  ;;  %v535_v29 = vadd.f32 %v2480_v10, %v520_v20  ;;  %v536_v30 = vadd.f32 %v2480_v10, %v521_v21  ;;  %v523_v45 = vmul.f32 %v2479_v7, %v508_v42  ;;  %v1030_v14 = vld [vmem:[#allocation2 + $0x4] sm:$0x1]  ;;  %v495_v25 = vld [vmem:[#allocation2 + $0x3c] sm:$0x1]  ;;  %v1641_v39 = vld [vmem:[#allocation2 + $0x48] sm:$0xe] }
  0x21   : > { %v539_v27 = vmax.f32 %v531_v18, 0.0  ;;  %v540_v28 = vmax.f32 %v532_v19, 0.0  ;;  %v541_v34 = vmax.f32 %v533_v23, 0.0  ;;  %v537_v47 = vadd.f32 %v2480_v10, %v522_v44  ;;  %v866_v15 = vld [vmem:[#allocation2 + $0x4] sm:$0x1]  ;;  %s2588_s20 = sshll.u32 %s3012_s29, 10 }
  0x22   : > { %v542_v36 = vmax.f32 %v534_v24, 0.0  ;;  %v543_v37 = vmax.f32 %v535_v29, 0.0  ;;  %v544_v38 = vmax.f32 %v536_v30, 0.0  ;;  %2673 = vmatpush3.bf16.msra.mxu0 %v2789_v17  ;;  %v538_v48 = vadd.f32 %v2480_v10, %v523_v45  ;;  %v469_v24 = vld [vmem:[#allocation2 + $0x38] sm:$0x1]  ;;  %s2918_s29 = smov [#allocation4]  }
  0x23   : > { %v547_v33 = vpack.c.bf16 %v540_v28, %v539_v27  ;;  %2674 = vmatprep.subr.bf16.mxu0 %v2790_v32  ;;  %v545_v50 = vmax.f32 %v537_v47, 0.0  ;;  %v885_v2 = vshrl.u32 %v865_v1, 16  ;;  %v888_v3 = vshll.u32 %v865_v1, 16  ;;  %v466_v28 = vld [vmem:[#allocation2 + $0x30] sm:$0x1] }
  0x24   : > { %v548_v46 = vpack.c.bf16 %v542_v36, %v541_v34  ;;  %v549_v49 = vpack.c.bf16 %v544_v38, %v543_v37  ;;  %v546_v51 = vmax.f32 %v538_v48, 0.0  ;;  %v464_v7 = vsel %vm3079_vm4, 0, %v463_v4  ;;  %v492_v29 = vld [vmem:[#allocation2 + $0x34] sm:$0x1]  ;;  %v472_v30 = vld [vmem:[#allocation2 + $0x40] sm:$0x1] }
  0x25   : > { %2680 = vmatprep.mubr.bf16.mxu0 %v547_v33  ;;  %v887_v6 = vrot.slane %v885_v2, 4  ;;  %v890_v8 = vrot.slane %v888_v3, 5  ;;  %465 = vst [vmem:[#allocation2 + $0x28] sm:$0x1] %v464_v7  ;;  %v490_v10 = vsel %vm3085_vm5, 0, %v489_v9  ;;  %v2498_v11 = vrot.slane %v1029_v5, 9 }
  0x26   : > { %2675 = vmatpush3.bf16.msra.mxu0 %v2790_v32  ;;  %v550_v52 = vpack.c.bf16 %v546_v51, %v545_v50  ;;  %491 = vst [vmem:[#allocation2 + $0x2c] sm:$0x1] %v490_v10  ;;  %vm881_vm9 = vsmask.f32 3328  ;;  %v1066_v16 = vrot.slane %v1030_v14, 5  ;;  %v894_v18 = vshll.u32 %v866_v15, 16 }
  0x27   : > { %2676 = vmatprep.subr.bf16.mxu0 %v2791_v40  ;;  %v891_v12 = vor.u32 %v890_v8, %v887_v6  ;;  %vm882_vm10 = vsmask.f32 7440  ;;  %v470_v26 = vsel %vm3079_vm4, 0, %v469_v24  ;;  %v496_v27 = vsel %vm3085_vm5, 0, %v495_v25  ;;  %v498_v32 = vld [vmem:[#allocation2 + $0x44] sm:$0x1] }
  0x28   : > { %vm3124_vm11 = vmor %vm881_vm9, %vm882_vm10  ;;  %v1067_v20 = vsel %vm3120_vm8, %v2498_v11, %v1066_v16  ;;  %v896_v21 = vrot.slane %v894_v18, 5  ;;  %471 = vst [vmem:[#allocation2 + $0x38] sm:$0x1] %v470_v26  ;;  %v467_v33 = vsel %vm3079_vm4, 0, %v466_v28  ;;  %v493_v34 = vsel %vm3085_vm5, 0, %v492_v29  ;;  %v2793_v37 = vld [vmem:[%s3774_s5 + $0x80] sm:$0xff]  }
  0x29   : > { %v892_v17 = vrot.slane %v891_v12, 4  ;;  %1096 = vrot.lane.b32.xlu0 %v1067_v20, %s2913_s23  ;;  %497 = vst [vmem:[#allocation2 + $0x3c] sm:$0x1] %v496_v27  ;;  %v473_v35 = vsel %vm3079_vm4, 0, %v472_v30  ;;  %v499_v36 = vsel %vm3085_vm5, 0, %v498_v32  ;;  %v2795_v38 = vld [vmem:[%s3774_s5 + $0x88] sm:$0xff]  }
  0x2a   : > { %2677 = vmatpush3.bf16.msra.mxu0 %v2791_v40  ;;  %468 = vst [vmem:[#allocation2 + $0x30] sm:$0x1] %v467_v33  ;;  %494 = vst [vmem:[#allocation2 + $0x34] sm:$0x1] %v493_v34  ;;  %v1642_v40 = vld [vmem:[#allocation2 + $0x4c] sm:$0x1] }
  0x2b   : > { %2678 = vmatprep.subr.bf16.mxu0 %v2792_v43  ;;  %v897_v23 = vsel %vm3124_vm11, %v892_v17, %v896_v21  ;;  %474 = vst [vmem:[#allocation2 + $0x40] sm:$0x1] %v473_v35  ;;  %500 = vst [vmem:[#allocation2 + $0x44] sm:$0x1] %v499_v36  ;;  %v2521_v31 = vrot.slane %v1641_v39, 9  ;;  %v1689_v41 = vrot.slane %v1642_v40, 5 }
  0x2c   : > { %v3159_v44 = vld [vmem:[%s3773_s4] ss:$0 sm:$0xff]  ;;  %v813_v63 = vld [vmem:[#allocation2 + $0x18] sm:$0xf]  ;;  %v816_v0 = vld [vmem:[#allocation2 + $0x1c] sm:$0x1] }
  0x2d   : > { %996 = vrot.lane.b32.xlu0 %v897_v23, %s2914_s24  ;;  %v1690_v42 = vsel %vm3120_vm8, %v2521_v31, %v1689_v41  ;;  %v801_v6 = vld [vmem:[#allocation2 + $0x8] sm:$0xf]  ;;  %v804_v14 = vld [vmem:[#allocation2 + $0xc] sm:$0x1]  ;;  %v819_v25 = vld [vmem:[#allocation2 + $0x20] sm:$0xf] }
  0x2e   : > { %2679 = vmatpush3.bf16.msra.mxu0 %v2792_v43  ;;  %1706 = vst.msk [vmem:[#allocation3 + $0x5c] sm:$0xf] %vm440_vm0, %v1690_v42  ;;  %v849_v43 = vld [vmem:[#allocation2] sm:$0xf]  ;;  %v822_v30 = vld [vmem:[#allocation2 + $0x24] sm:$0x1] }
  0x2f   : > { %2688 = vmatprep.subr.bf16.mxu0 %v2793_v37  ;;  %857 = vst.msk [vmem:[#allocation3] sm:$0xf] %vm440_vm0, %v849_v43  ;;  %v810_v39 = vld [vmem:[#allocation2 + $0x14] sm:$0x1]  ;;  %vm1934_vm15 = vcmask 261120   ;;  %vm1169_vm1 = vcmask 1044224  }
  0x30   : > { %vm2318_vm2 = vcmask 1043456   ;;  %vm2314_vm3 = vcmask 64512  }
  0x31   : > { %2681 = vmatmul.mubr.bf16.vlgmr.msra.gmra.mrb[0].mxu0 %v548_v46 }
  0x32   : > { %2684 = vmatprep.mubr.bf16.mxu0 %v549_v49  ;;  %2689 = vmatpush3.bf16.msra.mxu0 %v2793_v37 }
  0x33   : > { %2690 = vmatprep.subr.bf16.mxu0 %v2795_v38 }
  0x36   : > { %2691 = vmatpush3.bf16.msra.mxu0 %v2795_v38  ;;  %v807_v38 = vld [vmem:[#allocation2 + $0x10] sm:$0xf] }
  0x39   : > { %2685 = vmatmul.mubr.bf16.gmra.mrb[4].mxu0 %v550_v52 }
  0x9b   : > { %v3165_v59 = vpop.permute.xlu0 %1096 }
  0x9f   : > { %v997_v20 = vpop.permute.xlu0 %996 }
  0xa0   : > { %1021 = vst.msk [vmem:[#allocation3] sm:$0xf] %vm1020_vm12, %v997_v20  ;;  %v843_v20 = vld [vmem:[#allocation2 + $0x40] sm:$0xf] }
  0xa1   : > { %1121 = vst.msk [vmem:[#allocation3] sm:$0xf] %vm1120_vm14, %v3165_v59 }
 0x104   : > { %v2682_v45 = vpop.f32.mrb[0].mxu0 }
 0x105   : > { %v665_v46 = vadd.f32 %v2682_v45, %v3159_v44  ;;  %v656_v47 = vpop.f32.mrb[1].mxu0 }
 0x106   : > { %v657_v48 = vadd.f32 %v3159_v44, %v656_v47  ;;  %v2683_v49 = vpop.f32.mrb[2].mxu0 }
 0x107   : > { %v689_v50 = vmax.f32 %v665_v46, 0.0  ;;  %v668_v51 = vadd.f32 %v2683_v49, %v3159_v44  ;;  %v659_v52 = vpop.f32.mrb[3].mxu0 }
 0x108   : > { %v687_v53 = vmax.f32 %v657_v48, 0.0  ;;  %v660_v54 = vadd.f32 %v3159_v44, %v659_v52 }
 0x109   : > { %v2582_v55 = vpack.c.bf16 %v689_v50, %v689_v50  ;;  %v690_v56 = vmax.f32 %v668_v51, 0.0 }
 0x10a   : > { %v2580_v57 = vpack.c.bf16 %v687_v53, %v687_v53  ;;  %v688_v58 = vmax.f32 %v660_v54, 0.0 }
 0x10b   : > { %v736_v60 = vshrl.u32 %v2582_v55, 16  ;;  %v2583_v61 = vpack.c.bf16 %v690_v56, %v690_v56  ;;  %v739_v62 = vshll.u32 %v2582_v55, 16 }
 0x10c   : > { %v720_v1 = vshrl.u32 %v2580_v57, 16  ;;  %v723_v2 = vshll.u32 %v2580_v57, 16  ;;  %v2581_v3 = vpack.c.bf16 %v688_v58, %v688_v58  ;;  %v2686_v4 = vpop.f32.mrb[4].mxu0 }
 0x10d   : > { %v738_v5 = vrot.slane %v736_v60, 7  ;;  %v744_v7 = vshrl.u32 %v2583_v61, 16  ;;  %v747_v8 = vshll.u32 %v2583_v61, 16  ;;  %v681_v9 = vadd.f32 %v2686_v4, %v3159_v44  ;;  %v672_v10 = vpop.f32.mrb[5].mxu0  ;;  %v825_v61 = vld [vmem:[#allocation2 + $0x28] sm:$0xf] }
 0x10e   : > { %v722_v12 = vrot.slane %v720_v1, 7  ;;  %v728_v15 = vshrl.u32 %v2581_v3, 16  ;;  %v731_v16 = vshll.u32 %v2581_v3, 16  ;;  %v673_v17 = vadd.f32 %v3159_v44, %v672_v10  ;;  %v2687_v18 = vpop.f32.mrb[6].mxu0 }
 0x10f   : > { %v741_v21 = vor.u32 %v739_v62, %v738_v5  ;;  %v742_v23 = vrot.slane %v738_v5, 4  ;;  %v746_v24 = vrot.slane %v744_v7, 7  ;;  %v693_v26 = vmax.f32 %v681_v9, 0.0  ;;  %v675_v27 = vpop.f32.mrb[7].mxu0  ;;  %v837_v62 = vld [vmem:[#allocation2 + $0x38] sm:$0xf] }
 0x110   : > { %v725_v28 = vor.u32 %v723_v2, %v722_v12  ;;  %v726_v29 = vrot.slane %v722_v12, 4  ;;  %v730_v32 = vrot.slane %v728_v15, 7  ;;  %v691_v33 = vmax.f32 %v673_v17, 0.0 }
 0x111   : > { %v814_v34 = vsel %vm3170_vm13, %v741_v21, %v813_v63  ;;  %v817_v35 = vsel %vm3079_vm4, %v742_v23, %v816_v0  ;;  %v749_v36 = vor.u32 %v747_v8, %v746_v24  ;;  %v750_v37 = vrot.slane %v746_v24, 4  ;;  %v840_v63 = vld [vmem:[#allocation2 + $0x3c] sm:$0x1]  ;;  %v828_v0 = vld [vmem:[#allocation2 + $0x2c] sm:$0x1] }
 0x112   : > { %815 = vst [vmem:[#allocation2 + $0x18] sm:$0xf] %v814_v34  ;;  %818 = vst [vmem:[#allocation2 + $0x1c] sm:$0x1] %v817_v35  ;;  %v802_v40 = vsel %vm3170_vm13, %v725_v28, %v801_v6  ;;  %v805_v31 = vsel %vm3079_vm4, %v726_v29, %v804_v14  ;;  %v733_v41 = vor.u32 %v731_v16, %v730_v32  ;;  %v734_v42 = vrot.slane %v730_v32, 4 }
 0x113   : > { %803 = vst [vmem:[#allocation2 + $0x8] sm:$0xf] %v802_v40  ;;  %806 = vst [vmem:[#allocation2 + $0xc] sm:$0x1] %v805_v31  ;;  %v820_v43 = vsel %vm3170_vm13, %v749_v36, %v819_v25  ;;  %v823_v45 = vsel %vm3079_vm4, %v750_v37, %v822_v30  ;;  %v2586_v46 = vpack.c.bf16 %v693_v26, %v693_v26  ;;  %v846_v21 = vld [vmem:[#allocation2 + $0x44] sm:$0x1] }
 0x114   : > { %v2584_v47 = vpack.c.bf16 %v691_v33, %v691_v33  ;;  %821 = vst [vmem:[#allocation2 + $0x20] sm:$0xf] %v820_v43  ;;  %824 = vst [vmem:[#allocation2 + $0x24] sm:$0x1] %v823_v45  ;;  %v808_v48 = vsel %vm3170_vm13, %v733_v41, %v807_v38  ;;  %v811_v49 = vsel %vm3079_vm4, %v734_v42, %v810_v39  ;;  %v831_v23 = vld [vmem:[#allocation2 + $0x30] sm:$0xf] }
 0x115   : > { %v684_v50 = vadd.f32 %v2687_v18, %v3159_v44  ;;  %v676_v51 = vadd.f32 %v3159_v44, %v675_v27  ;;  %809 = vst [vmem:[#allocation2 + $0x10] sm:$0xf] %v808_v48  ;;  %812 = vst [vmem:[#allocation2 + $0x14] sm:$0x1] %v811_v49  ;;  %v768_v52 = vshrl.u32 %v2586_v46, 16  ;;  %v771_v53 = vshll.u32 %v2586_v46, 16 }
 0x116   : > { %v752_v54 = vshrl.u32 %v2584_v47, 16  ;;  %v755_v55 = vshll.u32 %v2584_v47, 16  ;;  %v834_v29 = vld [vmem:[#allocation2 + $0x34] sm:$0x1]  ;;  %v3206_v34 = vld [vmem:[#allocation2 + $0x48] sm:$0xf] }
 0x117   : > { %v694_v56 = vmax.f32 %v684_v50, 0.0  ;;  %v692_v57 = vmax.f32 %v676_v51, 0.0  ;;  %v770_v58 = vrot.slane %v768_v52, 7 }
 0x118   : > { %v754_v60 = vrot.slane %v752_v54, 7 }
 0x119   : > { %v2587_v1 = vpack.c.bf16 %v694_v56, %v694_v56  ;;  %v2585_v44 = vpack.c.bf16 %v692_v57, %v692_v57  ;;  %v773_v2 = vor.u32 %v771_v53, %v770_v58  ;;  %v774_v3 = vrot.slane %v770_v58, 4  ;;  %v1420_v6 = vld [vmem:[#allocation2 + $0x18] sm:$0xf]  ;;  %v1036_v40 = vld [vmem:[#allocation2 + $0x1c] sm:$0x1] }
 0x11a   : > { %v757_v4 = vor.u32 %v755_v55, %v754_v60  ;;  %v758_v5 = vrot.slane %v754_v60, 4  ;;  %1437 = vrot.lane.b32.xlu1 %v1420_v6, %s2913_s23  ;;  %v1131_v7 = vld [vmem:[#allocation2 + $0x18] sm:$0xf]  ;;  %v1129_v33 = vld [vmem:[#allocation2 + $0x8] sm:$0xf]  ;;  %v1078_v43 = vrot.slane %v1036_v40, 5 }
 0x11b   : > { %v776_v8 = vshrl.u32 %v2587_v1, 16  ;;  %v779_v9 = vshll.u32 %v2587_v1, 16  ;;  %v760_v10 = vshrl.u32 %v2585_v44, 16  ;;  %v763_v12 = vshll.u32 %v2585_v44, 16  ;;  %v1631_v14 = vld [vmem:[#allocation2 + $0x20] sm:$0xe]  ;;  %1149 = vrot.lane.b32.xlu0 %v1131_v7, %s2915_s15 }
 0x11c   : > { %v1632_v15 = vld [vmem:[#allocation2 + $0x24] sm:$0x1]  ;;  %v838_v59 = vsel %vm3170_vm13, %v773_v2, %v837_v62  ;;  %v841_v16 = vsel %vm3079_vm4, %v774_v3, %v840_v63  ;;  %v826_v17 = vsel %vm3170_vm13, %v757_v4, %v825_v61  ;;  %v829_v18 = vsel %vm3079_vm4, %v758_v5, %v828_v0  ;;  %v1627_v26 = vld [vmem:[#allocation2 + $0x10] sm:$0xe]  ;;  %v1629_v30 = vld [vmem:[#allocation2 + $0x18] sm:$0xe] }
 0x11d   : > { %v2516_v24 = vrot.slane %v1631_v14, 9  ;;  %v1669_v25 = vrot.slane %v1632_v15, 5  ;;  %839 = vst [vmem:[#allocation2 + $0x38] sm:$0xf] %v838_v59  ;;  %842 = vst [vmem:[#allocation2 + $0x3c] sm:$0x1] %v841_v16 }
 0x11e   : > { %827 = vst [vmem:[#allocation2 + $0x28] sm:$0xf] %v826_v17  ;;  %830 = vst [vmem:[#allocation2 + $0x2c] sm:$0x1] %v829_v18  ;;  %v778_v27 = vrot.slane %v776_v8, 7  ;;  %v762_v28 = vrot.slane %v760_v10, 7 }
 0x11f   : > { %v1132_v32 = vld [vmem:[#allocation2 + $0x20] sm:$0xf]  ;;  %v1670_v35 = vsel %vm3120_vm8, %v2516_v24, %v1669_v25  ;;  %v1035_v39 = vld [vmem:[#allocation2 + $0x18] sm:$0xe]  ;;  %1145 = vrot.lane.b32.xlu0 %v1129_v33, %s2915_s15  ;;  %v1130_v41 = vld [vmem:[#allocation2 + $0x10] sm:$0xf] }
 0x120   : > { %v781_v36 = vor.u32 %v779_v9, %v778_v27  ;;  %v782_v37 = vrot.slane %v778_v27, 4  ;;  %1151 = vrot.lane.b32.xlu1 %v1132_v32, %s2915_s15  ;;  %v765_v38 = vor.u32 %v763_v12, %v762_v28  ;;  %1701 = vst.msk [vmem:[#allocation3 + $0x20] sm:$0xf] %vm440_vm0, %v1670_v35  ;;  %v766_v31 = vrot.slane %v762_v28, 4  ;;  %v1628_v49 = vld [vmem:[#allocation2 + $0x14] sm:$0x1] }
 0x121   : > { %v2501_v42 = vrot.slane %v1035_v39, 9  ;;  %v2514_v45 = vrot.slane %v1627_v26, 9  ;;  %v1630_v50 = vld [vmem:[#allocation2 + $0x1c] sm:$0x1]  ;;  %v2515_v51 = vrot.slane %v1629_v30, 9  ;;  %v1661_v53 = vrot.slane %v1628_v49, 5 }
 0x122   : > { %v844_v46 = vsel %vm3170_vm13, %v781_v36, %v843_v20  ;;  %v847_v47 = vsel %vm3079_vm4, %v782_v37, %v846_v21  ;;  %v832_v48 = vsel %vm3170_vm13, %v765_v38, %v831_v23  ;;  %v835_v52 = vsel %vm3079_vm4, %v766_v31, %v834_v29  ;;  %v1322_v55 = vld [vmem:[#allocation2 + $0x8] sm:$0xe]  ;;  %v1323_v56 = vld [vmem:[#allocation2 + $0xc] sm:$0x1]  ;;  %v1421_v57 = vld [vmem:[#allocation2 + $0x20] sm:$0xf] }
 0x123   : > { %845 = vst [vmem:[#allocation2 + $0x40] sm:$0xf] %v844_v46  ;;  %848 = vst [vmem:[#allocation2 + $0x44] sm:$0x1] %v847_v47  ;;  %v1665_v54 = vrot.slane %v1630_v50, 5  ;;  %v1582_v58 = vshrl.u32 %v3206_v34, 16  ;;  %1439 = vrot.lane.b32.xlu0 %v1421_v57, %s2913_s23  ;;  %v1662_v22 = vsel %vm3120_vm8, %v2514_v45, %v1661_v53  ;;  %v1079_v4 = vsel %vm3120_vm8, %v2501_v42, %v1078_v43 }
 0x124   : > { %833 = vst [vmem:[#allocation2 + $0x30] sm:$0xf] %v832_v48  ;;  %836 = vst [vmem:[#allocation2 + $0x34] sm:$0x1] %v835_v52  ;;  %1147 = vrot.lane.b32.xlu1 %v1130_v41, %s2915_s15  ;;  %v1326_v11 = vld [vmem:[#allocation2 + $0x18] sm:$0xe] }
 0x125   : > { %v1633_v60 = vld [vmem:[#allocation2 + $0x28] sm:$0xe]  ;;  %v1634_v61 = vld [vmem:[#allocation2 + $0x2c] sm:$0x1]  ;;  %v1666_v62 = vsel %vm3120_vm8, %v2515_v51, %v1665_v54  ;;  %v1327_v63 = vld [vmem:[#allocation2 + $0x1c] sm:$0x1] }
 0x126   : > { %v2517_v0 = vrot.slane %v1633_v60, 9  ;;  %v1673_v1 = vrot.slane %v1634_v61, 5  ;;  %v1419_v44 = vld [vmem:[#allocation2 + $0x10] sm:$0xf]  ;;  %1699 = vst.msk [vmem:[#allocation3 + $0x8] sm:$0xf] %vm440_vm0, %v1662_v22 }
 0x127   : > { %1700 = vst.msk [vmem:[#allocation3 + $0x14] sm:$0xf] %vm440_vm0, %v1666_v62  ;;  %v2506_v2 = vrot.slane %v1322_v55, 9  ;;  %v1356_v3 = vrot.slane %v1323_v56, 5  ;;  %v1037_v5 = vld [vmem:[#allocation2 + $0x20] sm:$0xe]  ;;  %1435 = vrot.lane.b32.xlu0 %v1419_v44, %s2913_s23 }
 0x128   : > { %v1038_v6 = vld [vmem:[#allocation2 + $0x24] sm:$0x1]  ;;  %v1031_v7 = vld [vmem:[#allocation2 + $0x8] sm:$0xe]  ;;  %v1674_v8 = vsel %vm3120_vm8, %v2517_v0, %v1673_v1  ;;  %1102 = vrot.lane.b32.xlu1 %v1079_v4, %s2913_s23  ;;  %v2508_v9 = vrot.slane %v1326_v11, 9  ;;  %v1364_v10 = vrot.slane %v1327_v63, 5 }
 0x129   : > { %v1032_v12 = vld [vmem:[#allocation2 + $0xc] sm:$0x1]  ;;  %v3235_v14 = vld [vmem:[#allocation2 + $0x38] sm:$0xe]  ;;  %1702 = vst.msk [vmem:[#allocation3 + $0x2c] sm:$0xf] %vm440_vm0, %v1674_v8  ;;  %v1357_v23 = vsel %vm3120_vm8, %v2506_v2, %v1356_v3 }
 0x12a   : > { %v1033_v15 = vld [vmem:[#allocation2 + $0x10] sm:$0xe]  ;;  %v3239_v59 = vrot.slane %v1582_v58, 4  ;;  %v1585_v16 = vshll.u32 %v3206_v34, 16  ;;  %v2502_v17 = vrot.slane %v1037_v5, 9  ;;  %v1082_v18 = vrot.slane %v1038_v6, 5 }
 0x12b   : > { %v2499_v20 = vrot.slane %v1031_v7, 9  ;;  %v1070_v21 = vrot.slane %v1032_v12, 5  ;;  %v1034_v24 = vld [vmem:[#allocation2 + $0x14] sm:$0x1]  ;;  %v1328_v25 = vld [vmem:[#allocation2 + $0x20] sm:$0xe]  ;;  %v1365_v27 = vsel %vm3120_vm8, %v2508_v9, %v1364_v10 }
 0x12c   : > { %v1329_v26 = vld [vmem:[#allocation2 + $0x24] sm:$0x1]  ;;  %1386 = vrot.lane.b32.xlu1 %v1357_v23, %s2914_s24  ;;  %v2500_v28 = vrot.slane %v1033_v15, 9  ;;  %v1324_v29 = vld [vmem:[#allocation2 + $0x10] sm:$0xe]  ;;  %v2519_v32 = vrot.slane %v3235_v14, 9  ;;  %1390 = vrot.lane.b32.xlu0 %v1365_v27, %s2914_s24  ;;  %v1083_v46 = vsel %vm3120_vm8, %v2502_v17, %v1082_v18 }
 0x12d   : > { %v1325_v30 = vld [vmem:[#allocation2 + $0x14] sm:$0x1]  ;;  %v3248_v33 = vld [vmem:[#allocation2 + $0x40] sm:$0xe]  ;;  %v1635_v34 = vld [vmem:[#allocation2 + $0x30] sm:$0xe]  ;;  %v1071_v31 = vsel %vm3120_vm8, %v2499_v20, %v1070_v21 }
 0x12e   : > { %v2794_v35 = vld [vmem:[#allocation3 + $0x8] ss:$12 sps:$4 sm:$0xff]   ;;  %v1074_v36 = vrot.slane %v1034_v24, 5  ;;  %v2509_v37 = vrot.slane %v1328_v25, 9  ;;  %v1368_v38 = vrot.slane %v1329_v26, 5  ;;  %v2507_v39 = vrot.slane %v1324_v29, 9 }
 0x12f   : > { %v867_v40 = vld [vmem:[#allocation2 + $0x8] sm:$0xf]  ;;  %2692 = vmatprep.mubr.msk.bf16.mxu0 %vm1934_vm15, %v2794_v35  ;;  %v868_v41 = vld [vmem:[#allocation2 + $0xc] sm:$0x1]  ;;  %v1469_v45 = vld [vmem:[#allocation2 + $0x18] sm:$0xf] }
 0x130   : > { %v899_v42 = vshrl.u32 %v867_v40, 16  ;;  %v902_v43 = vshll.u32 %v867_v40, 16  ;;  %1098 = vrot.lane.b32.xlu1 %v1071_v31, %s2913_s23  ;;  %v2796_v47 = vld [vmem:[#allocation3 + $0x20] ss:$12 sps:$4 sm:$0xff]   ;;  %v1360_v48 = vrot.slane %v1325_v30, 5  ;;  %v1498_v49 = vshrl.u32 %v1469_v45, 16  ;;  %1104 = vrot.lane.b32.xlu0 %v1083_v46, %s2913_s23 }
 0x131   : > { %v908_v52 = vshll.u32 %v868_v41, 16  ;;  %v1470_v53 = vld [vmem:[#allocation2 + $0x1c] sm:$0x1]  ;;  %v1501_v54 = vshll.u32 %v1469_v45, 16  ;;  %2693 = vmatmul.mubr.msk.bf16.vlgmr.msra.gmra.mrb[8].mxu0 %vm1934_vm15, %v2796_v47  ;;  %v2518_v57 = vrot.slane %v1635_v34, 9  ;;  %v2520_v11 = vrot.slane %v3248_v33, 9 }
 0x132   : > { %v901_v50 = vrot.slane %v899_v42, 4  ;;  %v904_v51 = vrot.slane %v902_v43, 5  ;;  %v1500_v55 = vrot.slane %v1498_v49, 4  ;;  %v1507_v56 = vshll.u32 %v1470_v53, 16  ;;  %v1636_v22 = vld [vmem:[#allocation2 + $0x34] sm:$0x1] }
 0x133   : > { %v1369_v58 = vsel %vm3120_vm8, %v2509_v37, %v1368_v38  ;;  %v1503_v61 = vrot.slane %v1501_v54, 5  ;;  %v1638_v62 = vld [vmem:[#allocation2 + $0x3c] sm:$0x1]  ;;  %v2799_v63 = vld [vmem:[%s3774_s5 + $0x40] sm:$0xff]   ;;  %v1075_v0 = vsel %vm3120_vm8, %v2500_v28, %v1074_v36  ;;  %v1133_v1 = vld [vmem:[#allocation2 + $0x28] sm:$0xf]  ;;  %v1361_v6 = vsel %vm3120_vm8, %v2507_v39, %v1360_v48 }
 0x134   : > { %v905_v60 = vor.u32 %v904_v51, %v901_v50  ;;  %1392 = vrot.lane.b32.xlu1 %v1369_v58, %s2914_s24  ;;  %v1677_v44 = vrot.slane %v1636_v22, 5  ;;  %v1681_v2 = vrot.slane %v1638_v62, 5  ;;  %v1640_v3 = vld [vmem:[#allocation2 + $0x44] sm:$0x1]  ;;  %v3268_v4 = vrot.slane %v1585_v16, 5  ;;  %1100 = vrot.lane.b32.xlu0 %v1075_v0, %s2913_s23  ;;  %v2801_v37 = vld [vmem:[%s3774_s5 + $0x48] sm:$0xff]  }
 0x135   : > { %v2800_v5 = vld [vmem:[%s3774_s5] sm:$0xff]   ;;  %v910_v7 = vrot.slane %v908_v52, 5  ;;  %v1504_v8 = vor.u32 %v1503_v61, %v1500_v55  ;;  %v1685_v9 = vrot.slane %v1640_v3, 5  ;;  %v871_v10 = vld [vmem:[#allocation2 + $0x18] sm:$0xf]  ;;  %2601 = vmatprep.subr.bf16.mxu1 %v2799_v63  ;;  %v1509_v23 = vrot.slane %v1507_v56, 5 }
 0x136   : > { %v872_v12 = vld [vmem:[#allocation2 + $0x1c] sm:$0x1]  ;;  %v1678_v14 = vsel %vm3120_vm8, %v2518_v57, %v1677_v44  ;;  %v1682_v15 = vsel %vm3120_vm8, %v2519_v32, %v1681_v2  ;;  %v927_v16 = vshrl.u32 %v871_v10, 16  ;;  %v930_v17 = vshll.u32 %v871_v10, 16  ;;  %v1471_v18 = vld [vmem:[#allocation2 + $0x20] sm:$0xf]  ;;  %2602 = vmatpush3.bf16.msra.mxu1 %v2800_v5 }
 0x137   : > { %v1472_v20 = vld [vmem:[#allocation2 + $0x24] sm:$0x1]  ;;  %v906_v21 = vrot.slane %v905_v60, 4  ;;  %1703 = vst.msk [vmem:[#allocation3 + $0x38] sm:$0xf] %vm440_vm0, %v1678_v14  ;;  %v1686_v24 = vsel %vm3120_vm8, %v2520_v11, %v1685_v9  ;;  %v936_v25 = vshll.u32 %v872_v12, 16  ;;  %2603 = vmatprep.subr.bf16.mxu1 %v2801_v37 }
 0x138   : > { %1704 = vst.msk [vmem:[#allocation3 + $0x44] sm:$0xf] %vm440_vm0, %v1682_v15  ;;  %v873_v26 = vld [vmem:[#allocation2 + $0x20] sm:$0xf]  ;;  %1388 = vrot.lane.b32.xlu1 %v1361_v6, %s2914_s24  ;;  %1705 = vst.msk [vmem:[#allocation3 + $0x50] sm:$0xf] %vm440_vm0, %v1686_v24  ;;  %1153 = vrot.lane.b32.xlu0 %v1133_v1, %s2915_s15 }
 0x139   : > { %v929_v27 = vrot.slane %v927_v16, 4  ;;  %v932_v28 = vrot.slane %v930_v17, 5  ;;  %v1512_v29 = vshrl.u32 %v1471_v18, 16  ;;  %v1515_v30 = vshll.u32 %v1471_v18, 16  ;;  %v874_v32 = vld [vmem:[#allocation2 + $0x24] sm:$0x1] }
 0x13a   : > { %v1505_v33 = vrot.slane %v1504_v8, 4  ;;  %v938_v34 = vrot.slane %v936_v25, 5  ;;  %v1521_v35 = vshll.u32 %v1472_v20, 16  ;;  %v941_v36 = vshrl.u32 %v873_v26, 16  ;;  %v1424_v38 = vld [vmem:[#allocation2 + $0x38] sm:$0xf] }
 0x13b   : > { %v933_v39 = vor.u32 %v932_v28, %v929_v27  ;;  %v1514_v40 = vrot.slane %v1512_v29, 4  ;;  %v1517_v31 = vrot.slane %v1515_v30, 5  ;;  %v944_v41 = vshll.u32 %v873_v26, 16  ;;  %v2802_v42 = vld [vmem:[%s3774_s5 + $0x8] sm:$0xff]   ;;  %v3295_v48 = vld [vmem:[#allocation2 + $0x38] sm:$0xe] }
 0x13c   : > { %v911_v43 = vsel %vm3124_vm11, %v906_v21, %v910_v7  ;;  %v1523_v45 = vrot.slane %v1521_v35, 5  ;;  %v943_v46 = vrot.slane %v941_v36, 4  ;;  %v950_v47 = vshll.u32 %v874_v32, 16  ;;  %v2803_v49 = vld [vmem:[%s3774_s5 + $0x50] sm:$0xff]   ;;  %1445 = vrot.lane.b32.xlu1 %v1424_v38, %s2913_s23  ;;  %v3301_v53 = vld [vmem:[#allocation2 + $0x3c] sm:$0x1]  ;;  %2604 = vmatpush3.bf16.msra.mxu1 %v2802_v42 }
 0x13d   : > { %v934_v50 = vrot.slane %v933_v39, 4  ;;  %v1518_v51 = vor.u32 %v1517_v31, %v1514_v40  ;;  %v946_v52 = vrot.slane %v944_v41, 5  ;;  %v2505_v54 = vrot.slane %v3295_v48, 9  ;;  %998 = vrot.lane.b32.xlu0 %v911_v43, %s2914_s24  ;;  %v3308_v57 = vld [vmem:[#allocation2 + $0x38] sm:$0xe]  ;;  %2605 = vmatprep.subr.bf16.mxu1 %v2803_v49 }
 0x13e   : > { %v3305_v55 = vrot.slane %v950_v47, 5  ;;  %v1094_v56 = vrot.slane %v3301_v53, 5  ;;  %v3310_v11 = vld [vmem:[#allocation2 + $0x3c] sm:$0x1]  ;;  %v1425_v58 = vld [vmem:[#allocation2 + $0x40] sm:$0xf]  ;;  %v1510_v22 = vsel %vm3124_vm11, %v1505_v33, %v1509_v23 }
 0x13f   : > { %v2797_v60 = vld [vmem:[#allocation3 + $0x38] ss:$12 sps:$4 sm:$0xff]   ;;  %v947_v61 = vor.u32 %v946_v52, %v943_v46  ;;  %v2798_v62 = vld [vmem:[#allocation3 + $0x50] ss:$12 sps:$4 sm:$0xff]   ;;  %v1519_v63 = vrot.slane %v1518_v51, 4  ;;  %v2512_v0 = vrot.slane %v3308_v57, 9  ;;  %v939_v9 = vsel %vm3124_vm11, %v934_v50, %v938_v34 }
 0x140   : > { %1597 = vrot.lane.b32.xlu1 %v1510_v22, %s2915_s15  ;;  %2696 = vmatprep.mubr.msk.bf16.mxu0 %vm1934_vm15, %v2797_v60  ;;  %v1380_v44 = vrot.slane %v3310_v11, 5  ;;  %v3318_v2 = vld [vmem:[#allocation2 + $0x28] sm:$0xe]  ;;  %v3320_v3 = vld [vmem:[#allocation2 + $0x2c] sm:$0x1]  ;;  %v2804_v23 = vld [vmem:[%s3774_s5 + $0x10] sm:$0xff]   ;;  %v1095_v22 = vsel %vm3120_vm8, %v2505_v54, %v1094_v56 }
 0x141   : > { %v948_v1 = vrot.slane %v947_v61, 4  ;;  %1447 = vrot.lane.b32.xlu0 %v1425_v58, %s2913_s23  ;;  %2697 = vmatmul.mubr.msk.bf16.gmra.mrb[12].mxu0 %vm1934_vm15, %v2798_v62  ;;  %v2503_v5 = vrot.slane %v3318_v2, 9  ;;  %v1086_v6 = vrot.slane %v3320_v3, 5  ;;  %v1467_v7 = vld [vmem:[#allocation2 + $0x10] sm:$0xf]  ;;  %v1524_v16 = vsel %vm3124_vm11, %v1519_v63, %v1523_v45  ;;  %v2805_v39 = vld [vmem:[%s3774_s5 + $0x58] sm:$0xff]  }
 0x142   : > { %v1468_v8 = vld [vmem:[#allocation2 + $0x14] sm:$0x1]  ;;  %v1484_v10 = vshrl.u32 %v1467_v7, 16  ;;  %v1487_v12 = vshll.u32 %v1467_v7, 16  ;;  %v3328_v14 = vld [vmem:[#allocation2 + $0x40] sm:$0xe]  ;;  %2606 = vmatpush3.bf16.msra.mxu1 %v2804_v23  ;;  %v1381_v62 = vsel %vm3120_vm8, %v2512_v0, %v1380_v44 }
 0x143   : > { %v3330_v15 = vld [vmem:[#allocation2 + $0x44] sm:$0x1]  ;;  %v1493_v17 = vshll.u32 %v1468_v8, 16  ;;  %v2513_v18 = vrot.slane %v3328_v14, 9  ;;  %v869_v21 = vld [vmem:[#allocation2 + $0x10] sm:$0xf]  ;;  %v953_v43 = vsel %vm3124_vm11, %v948_v1, %v3305_v55  ;;  %2607 = vmatprep.subr.bf16.mxu1 %v2805_v39 }
 0x144   : > { %v1384_v20 = vrot.slane %v3330_v15, 5  ;;  %1002 = vrot.lane.b32.xlu1 %v939_v9, %s2914_s24  ;;  %v1486_v24 = vrot.slane %v1484_v10, 4  ;;  %v1489_v25 = vrot.slane %v1487_v12, 5  ;;  %v870_v26 = vld [vmem:[#allocation2 + $0x14] sm:$0x1]  ;;  %v913_v27 = vshrl.u32 %v869_v21, 16 }
 0x145   : > { %v916_v28 = vshll.u32 %v869_v21, 16  ;;  %1599 = vrot.lane.b32.xlu0 %v1524_v16, %s2915_s15  ;;  %v3341_v29 = vrot.slane %v1493_v17, 5  ;;  %v922_v30 = vshll.u32 %v870_v26, 16  ;;  %v1332_v32 = vld [vmem:[#allocation2 + $0x30] sm:$0xe]  ;;  %v2806_v42 = vld [vmem:[%s3774_s5 + $0x18] sm:$0xff]   ;;  %v1087_v16 = vsel %vm3120_vm8, %v2503_v5, %v1086_v6 }
 0x146   : > { %v1333_v33 = vld [vmem:[#allocation2 + $0x34] sm:$0x1]  ;;  %v1422_v34 = vld [vmem:[#allocation2 + $0x28] sm:$0xf]  ;;  %v1490_v35 = vor.u32 %v1489_v25, %v1486_v24  ;;  %v915_v36 = vrot.slane %v913_v27, 4  ;;  %v2511_v38 = vrot.slane %v1332_v32, 9  ;;  %2608 = vmatpush3.bf16.msra.mxu1 %v2806_v42  ;;  %v3407_v21 = vsel %vm3120_vm8, %v2513_v18, %v1384_v20 }
 0x147   : > { %v918_v37 = vrot.slane %v916_v28, 5  ;;  %v3346_v40 = vrot.slane %v922_v30, 5  ;;  %v3348_v31 = vld [vmem:[#allocation2 + $0x28] sm:$0xe]  ;;  %v3350_v41 = vld [vmem:[#allocation2 + $0x2c] sm:$0x1] }
 0x148   : > { %1441 = vrot.lane.b32.xlu1 %v1422_v34, %s2913_s23  ;;  %v3359_v45 = vrot.slane %v1490_v35, 4  ;;  %v1376_v47 = vrot.slane %v1333_v33, 5  ;;  %v1477_v49 = vld [vmem:[#allocation2 + $0x38] sm:$0xf]  ;;  %v1478_v50 = vld [vmem:[#allocation2 + $0x3c] sm:$0x1] }
 0x149   : > { %v919_v46 = vor.u32 %v918_v37, %v915_v36  ;;  %1004 = vrot.lane.b32.xlu0 %v953_v43, %s2914_s24  ;;  %v1134_v51 = vld [vmem:[#allocation2 + $0x30] sm:$0xf]  ;;  %v1554_v52 = vshrl.u32 %v1477_v49, 16  ;;  %v1557_v11 = vshll.u32 %v1477_v49, 16  ;;  %v1563_v58 = vshll.u32 %v1478_v50, 16  ;;  %v2807_v55 = vld [vmem:[%s3774_s5 + $0x60] sm:$0xff]  }
 0x14a   : > { %v3362_v60 = vld [vmem:[#allocation2 + $0x30] sm:$0xe]  ;;  %v2510_v63 = vrot.slane %v3348_v31, 9  ;;  %v1372_v1 = vrot.slane %v3350_v41, 5  ;;  %v3379_v7 = vld [vmem:[#allocation2 + $0x34] sm:$0x1]  ;;  %2609 = vmatprep.subr.bf16.mxu1 %v2807_v55  ;;  %v1496_v17 = vsel %vm3124_vm11, %v3359_v45, %v3341_v29  ;;  %v3411_v3 = vsel %vm3120_vm8, %v2511_v38, %v1376_v47 }
 0x14b   : > { %v1423_v61 = vld [vmem:[#allocation2 + $0x30] sm:$0xf]  ;;  %v879_v8 = vld [vmem:[#allocation2 + $0x38] sm:$0xf]  ;;  %v3381_v9 = vrot.slane %v919_v46, 4  ;;  %v1556_v53 = vrot.slane %v1554_v52, 4 }
 0x14c   : > { %v1559_v10 = vrot.slane %v1557_v11, 5  ;;  %v2504_v48 = vrot.slane %v3362_v60, 9  ;;  %v880_v12 = vld [vmem:[#allocation2 + $0x3c] sm:$0x1]  ;;  %1155 = vrot.lane.b32.xlu1 %v1134_v51, %s2915_s15  ;;  %v3385_v54 = vrot.slane %v1563_v58, 5  ;;  %v983_v56 = vshrl.u32 %v879_v8, 16 }
 0x14d   : > { %v986_v57 = vshll.u32 %v879_v8, 16  ;;  %v992_v0 = vshll.u32 %v880_v12, 16  ;;  %v2808_v44 = vld [vmem:[%s3774_s5 + $0x20] sm:$0xff]   ;;  %1443 = vrot.lane.b32.xlu0 %v1423_v61, %s2913_s23  ;;  %v1473_v2 = vld [vmem:[#allocation2 + $0x28] sm:$0xf]  ;;  %v1090_v15 = vrot.slane %v3379_v7, 5  ;;  %v3423_v36 = vsel %vm3120_vm8, %v2510_v63, %v1372_v1 }
 0x14e   : > { %v1474_v23 = vld [vmem:[#allocation2 + $0x2c] sm:$0x1]  ;;  %v1475_v5 = vld [vmem:[#allocation2 + $0x30] sm:$0xf]  ;;  %v1560_v6 = vor.u32 %v1559_v10, %v1556_v53  ;;  %v985_v24 = vrot.slane %v983_v56, 4  ;;  %v1526_v26 = vshrl.u32 %v1473_v2, 16  ;;  %2610 = vmatpush3.bf16.msra.mxu1 %v2808_v44 }
 0x14f   : > { %v988_v25 = vrot.slane %v986_v57, 5  ;;  %v1476_v27 = vld [vmem:[#allocation2 + $0x34] sm:$0x1]  ;;  %v1529_v14 = vshll.u32 %v1473_v2, 16  ;;  %v1535_v28 = vshll.u32 %v1474_v23, 16  ;;  %v1540_v29 = vshrl.u32 %v1475_v5, 16 }
 0x150   : > { %v875_v18 = vld [vmem:[#allocation2 + $0x28] sm:$0xf]  ;;  %1110 = vrot.lane.b32.xlu1 %v1095_v22, %s2913_s23  ;;  %v3415_v30 = vrot.slane %v992_v0, 5  ;;  %v1528_v32 = vrot.slane %v1526_v26, 4  ;;  %v1543_v33 = vshll.u32 %v1475_v5, 16  ;;  %v1549_v39 = vshll.u32 %v1476_v27, 16 }
 0x151   : > { %v989_v20 = vor.u32 %v988_v25, %v985_v24  ;;  %v876_v34 = vld [vmem:[#allocation2 + $0x2c] sm:$0x1]  ;;  %1398 = vrot.lane.b32.xlu0 %v1381_v62, %s2914_s24  ;;  %v1531_v37 = vrot.slane %v1529_v14, 5  ;;  %v1542_v38 = vrot.slane %v1540_v29, 4  ;;  %v877_v31 = vld [vmem:[#allocation2 + $0x30] sm:$0xf] }
 0x152   : > { %v2809_v35 = vld [vmem:[%s3774_s5 + $0x68] sm:$0xff]   ;;  %v3428_v42 = vrot.slane %v1560_v6, 4  ;;  %v3430_v43 = vrot.slane %v1535_v28, 5  ;;  %v1545_v45 = vrot.slane %v1543_v33, 5  ;;  %v955_v46 = vshrl.u32 %v875_v18, 16  ;;  %v2811_v58 = vld [vmem:[%s3774_s5 + $0x70] sm:$0xff]  }
 0x153   : > { %v2810_v41 = vld [vmem:[%s3774_s5 + $0x28] sm:$0xff]   ;;  %v878_v47 = vld [vmem:[#allocation2 + $0x34] sm:$0x1]  ;;  %2611 = vmatprep.subr.bf16.mxu1 %v2809_v35  ;;  %v1532_v49 = vor.u32 %v1531_v37, %v1528_v32  ;;  %v958_v50 = vshll.u32 %v875_v18, 16  ;;  %v964_v51 = vshll.u32 %v876_v34, 16  ;;  %v969_v52 = vshrl.u32 %v877_v31, 16 }
 0x154   : > { %v1479_v11 = vld [vmem:[#allocation2 + $0x40] sm:$0xf]  ;;  %2612 = vmatpush3.bf16.msra.mxu1 %v2810_v41  ;;  %1106 = vrot.lane.b32.xlu1 %v1087_v16, %s2913_s23  ;;  %v3436_v55 = vrot.slane %v989_v20, 4  ;;  %v1546_v61 = vor.u32 %v1545_v45, %v1542_v38  ;;  %v957_v22 = vrot.slane %v955_v46, 4  ;;  %v972_v62 = vshll.u32 %v877_v31, 16  ;;  %v2812_v41 = vld [vmem:[%s3774_s5 + $0x30] sm:$0xff]  }
 0x155   : > { %1595 = vrot.lane.b32.xlu0 %v1496_v17, %s2915_s15  ;;  %v3439_v63 = vrot.slane %v1532_v49, 4  ;;  %v3441_v1 = vrot.slane %v1549_v39, 5  ;;  %v960_v8 = vrot.slane %v958_v50, 5  ;;  %v971_v53 = vrot.slane %v969_v52, 4  ;;  %v3443_v10 = vld [vmem:[#allocation2 + $0x44] sm:$0x1]  ;;  %2613 = vmatprep.subr.bf16.mxu1 %v2811_v58 }
 0x156   : > { %v3445_v12 = vrot.slane %v964_v51, 5  ;;  %v974_v56 = vrot.slane %v972_v62, 5  ;;  %v978_v57 = vshll.u32 %v878_v47, 16  ;;  %v1568_v0 = vshrl.u32 %v1479_v11, 16  ;;  %v1179_v44 = vld [vmem:[#allocation2 + $0xc] sm:$0x1] }
 0x157   : > { %v925_v16 = vsel %vm3124_vm11, %v3381_v9, %v3346_v40  ;;  %v3451_v17 = vrot.slane %v1546_v61, 4  ;;  %v961_v2 = vor.u32 %v960_v8, %v957_v22  ;;  %v1571_v23 = vshll.u32 %v1479_v11, 16  ;;  %v1178_v5 = vld [vmem:[#allocation2 + $0x8] sm:$0xf]  ;;  %v1182_v6 = vld [vmem:[#allocation2 + $0x18] sm:$0xf] }
 0x158   : > { %1400 = vrot.lane.b32.xlu1 %v3407_v21, %s2914_s24  ;;  %v975_v24 = vor.u32 %v974_v56, %v971_v53  ;;  %v3455_v25 = vrot.slane %v978_v57, 5  ;;  %v3457_v26 = vrot.slane %v1568_v0, 4  ;;  %v1577_v27 = vshll.u32 %v3443_v10, 16  ;;  %v1183_v14 = vld [vmem:[#allocation2 + $0x1c] sm:$0x1]  ;;  %2614 = vmatpush3.bf16.msra.mxu1 %v2812_v41 }
 0x159   : > { %1000 = vrot.lane.b32.xlu0 %v925_v16, %s2914_s24  ;;  %v1566_v40 = vsel %vm3124_vm11, %v3428_v42, %v3385_v54  ;;  %v1091_v9 = vsel %vm3120_vm8, %v2504_v48, %v1090_v15  ;;  %v3471_v21 = vrot.slane %v961_v2, 4  ;;  %v3473_v28 = vrot.slane %v1571_v23, 5  ;;  %v1184_v29 = vld [vmem:[#allocation2 + $0x20] sm:$0xf]  ;;  %v1185_v18 = vld [vmem:[#allocation2 + $0x24] sm:$0x1] }
 0x15a   : > { %v1204_v20 = vshll.u32 %v1179_v44, 16  ;;  %v1195_v32 = vshrl.u32 %v1178_v5, 16  ;;  %v1198_v33 = vshll.u32 %v1178_v5, 16  ;;  %v1223_v34 = vshrl.u32 %v1182_v6, 16  ;;  %v1180_v35 = vld [vmem:[#allocation2 + $0x10] sm:$0xf] }
 0x15b   : > { %v995_v7 = vsel %vm3124_vm11, %v3436_v55, %v3415_v30  ;;  %v1538_v13 = vsel %vm3124_vm11, %v3439_v63, %v3430_v43  ;;  %v3483_v60 = vrot.slane %v975_v24, 4  ;;  %v1226_v48 = vshll.u32 %v1182_v6, 16  ;;  %v850_v54 = vld [vmem:[#allocation2 + $0x8] sm:$0xf]  ;;  %v852_v15 = vld [vmem:[#allocation2 + $0x18] sm:$0xf] }
 0x15c   : > { %1396 = vrot.lane.b32.xlu1 %v3411_v3, %s2914_s24  ;;  %v1552_v37 = vsel %vm3124_vm11, %v3451_v17, %v3441_v1  ;;  %v1197_v38 = vrot.slane %v1195_v32, 4  ;;  %v1200_v30 = vrot.slane %v1198_v33, 5  ;;  %v1225_v39 = vrot.slane %v1223_v34, 4  ;;  %858 = vst.msk [vmem:[#allocation3 + $0xc] sm:$0xf] %vm440_vm0, %v850_v54  ;;  %v2813_v58 = vld [vmem:[%s3774_s5 + $0x78] sm:$0xff]  }
 0x15d   : > { %860 = vst.msk [vmem:[#allocation3 + $0x24] sm:$0xf] %vm440_vm0, %v852_v15  ;;  %v853_v31 = vld [vmem:[#allocation2 + $0x20] sm:$0xf]  ;;  %1394 = vrot.lane.b32.xlu0 %v3423_v36, %s2914_s24  ;;  %v1574_v3 = vor.u32 %v3473_v28, %v3457_v26  ;;  %v1228_v42 = vrot.slane %v1226_v48, 5  ;;  %v1232_v45 = vshll.u32 %v1183_v14, 16  ;;  %2615 = vmatprep.subr.bf16.mxu1 %v2813_v58  ;;  %v967_v1 = vsel %vm3124_vm11, %v3471_v21, %v3445_v12 }
 0x15e   : > { %v1237_v46 = vshrl.u32 %v1184_v29, 16  ;;  %v1181_v47 = vld [vmem:[#allocation2 + $0x14] sm:$0x1]  ;;  %861 = vst.msk [vmem:[#allocation3 + $0x30] sm:$0xf] %vm440_vm0, %v853_v31  ;;  %v1201_v49 = vor.u32 %v1200_v30, %v1197_v38  ;;  %v1240_v50 = vshll.u32 %v1184_v29, 16 }
 0x15f   : > { %v1246_v51 = vshll.u32 %v1185_v18, 16  ;;  %v1209_v52 = vshrl.u32 %v1180_v35, 16  ;;  %v1190_v11 = vld [vmem:[#allocation2 + $0x38] sm:$0xf]  ;;  %v1206_v36 = vrot.slane %v1204_v20, 5  ;;  %v1229_v55 = vor.u32 %v1228_v42, %v1225_v39 }
 0x160   : > { %v1234_v61 = vrot.slane %v1232_v45, 5  ;;  %v1239_v22 = vrot.slane %v1237_v46, 4  ;;  %v1191_v62 = vld [vmem:[#allocation2 + $0x3c] sm:$0x1]  ;;  %1605 = vrot.lane.b32.xlu1 %v1566_v40, %s2915_s15  ;;  %v1202_v8 = vrot.slane %v1201_v49, 4  ;;  %v1242_v53 = vrot.slane %v1240_v50, 5 }
 0x161   : > { %v1248_v56 = vrot.slane %v1246_v51, 5  ;;  %v1211_v57 = vrot.slane %v1209_v52, 4  ;;  %v851_v0 = vld [vmem:[#allocation2 + $0x10] sm:$0xf]  ;;  %1108 = vrot.lane.b32.xlu0 %v1091_v9, %s2913_s23  ;;  %v1230_v44 = vrot.slane %v1229_v55, 4  ;;  %v1212_v16 = vshll.u32 %v1180_v35, 16 }
 0x162   : > { %v1218_v2 = vshll.u32 %v1181_v47, 16  ;;  %v1279_v23 = vshrl.u32 %v1190_v11, 16  ;;  %v1192_v5 = vld [vmem:[#allocation2 + $0x40] sm:$0xf]  ;;  %859 = vst.msk [vmem:[#allocation3 + $0x18] sm:$0xf] %vm440_vm0, %v851_v0  ;;  %v1207_v24 = vsel %vm3124_vm11, %v1202_v8, %v1206_v36  ;;  %v1243_v14 = vor.u32 %v1242_v53, %v1239_v22 }
 0x163   : > { %v1135_v6 = vld [vmem:[#allocation2 + $0x38] sm:$0xf]  ;;  %v1282_v40 = vshll.u32 %v1190_v11, 16  ;;  %v1288_v29 = vshll.u32 %v1191_v62, 16  ;;  %v1193_v18 = vld [vmem:[#allocation2 + $0x44] sm:$0x1]  ;;  %v1235_v9 = vsel %vm3124_vm11, %v1230_v44, %v1234_v61 }
 0x164   : > { %v1188_v20 = vld [vmem:[#allocation2 + $0x30] sm:$0xf]  ;;  %1314 = vst.msk [vmem:[#allocation3 + $0x4] sm:$0xf] %vm440_vm0, %v1207_v24  ;;  %v1214_v32 = vrot.slane %v1212_v16, 5  ;;  %v1220_v33 = vrot.slane %v1218_v2, 5  ;;  %1010 = vrot.lane.b32.xlu1 %v995_v7, %s2914_s24 }
 0x165   : > { %v1281_v34 = vrot.slane %v1279_v23, 4  ;;  %v1189_v35 = vld [vmem:[#allocation2 + $0x34] sm:$0x1]  ;;  %v1186_v48 = vld [vmem:[#allocation2 + $0x28] sm:$0xf]  ;;  %v2814_v54 = vld [vmem:[%s3774_s5 + $0x38] sm:$0xff]   ;;  %1157 = vrot.lane.b32.xlu0 %v1135_v6, %s2915_s15 }
 0x166   : > { %1316 = vst.msk [vmem:[#allocation3 + $0x1c] sm:$0xf] %vm440_vm0, %v1235_v9  ;;  %v1244_v15 = vrot.slane %v1243_v14, 4  ;;  %v1284_v38 = vrot.slane %v1282_v40, 5  ;;  %v1290_v30 = vrot.slane %v1288_v29, 5  ;;  %v1293_v39 = vshrl.u32 %v1192_v5, 16  ;;  %2616 = vmatpush3.bf16.msra.mxu1 %v2814_v54 }
 0x167   : > { %v856_v31 = vld [vmem:[#allocation2 + $0x38] sm:$0xf]  ;;  %v1215_v41 = vor.u32 %v1214_v32, %v1211_v57  ;;  %v1296_v42 = vshll.u32 %v1192_v5, 16  ;;  %v1302_v45 = vshll.u32 %v1193_v18, 16  ;;  %v1265_v46 = vshrl.u32 %v1188_v20, 16 }
 0x168   : > { %864 = vst.msk [vmem:[#allocation3 + $0x54] sm:$0xf] %vm440_vm0, %v856_v31  ;;  %v854_v47 = vld [vmem:[#allocation2 + $0x28] sm:$0xf]  ;;  %v1249_v7 = vsel %vm3124_vm11, %v1244_v15, %v1248_v56  ;;  %v1285_v49 = vor.u32 %v1284_v38, %v1281_v34  ;;  %v1295_v50 = vrot.slane %v1293_v39, 4  ;;  %v1268_v51 = vshll.u32 %v1188_v20, 16  ;;  %1601 = vrot.lane.b32.xlu1 %v1538_v13, %s2915_s15 }
 0x169   : > { %v1187_v52 = vld [vmem:[#allocation2 + $0x2c] sm:$0x1]  ;;  %862 = vst.msk [vmem:[#allocation3 + $0x3c] sm:$0xf] %vm440_vm0, %v854_v47  ;;  %v855_v11 = vld [vmem:[#allocation2 + $0x30] sm:$0xf]  ;;  %1603 = vrot.lane.b32.xlu0 %v1552_v37, %s2915_s15  ;;  %v981_v5 = vsel %vm3124_vm11, %v3483_v60, %v3455_v25  ;;  %v1588_v14 = vor.u32 %v3268_v4, %v3239_v59 }
 0x16a   : > { %1317 = vst.msk [vmem:[#allocation3 + $0x28] sm:$0xf] %vm440_vm0, %v1249_v7  ;;  %v1216_v58 = vrot.slane %v1215_v41, 4  ;;  %v1298_v36 = vrot.slane %v1296_v42, 5  ;;  %v1304_v55 = vrot.slane %v1302_v45, 5  ;;  %v1267_v61 = vrot.slane %v1265_v46, 4 }
 0x16b   : > { %863 = vst.msk [vmem:[#allocation3 + $0x48] sm:$0xf] %vm440_vm0, %v855_v11  ;;  %v1482_v22 = vld [vmem:[#allocation2 + $0x4c] sm:$0x1]  ;;  %v1286_v62 = vrot.slane %v1285_v49, 4  ;;  %v1270_v8 = vrot.slane %v1268_v51, 5 }
 0x16c   : > { %v1274_v53 = vshll.u32 %v1189_v35, 16  ;;  %v1251_v56 = vshrl.u32 %v1186_v48, 16  ;;  %v1221_v57 = vsel %vm3124_vm11, %v1216_v58, %v1220_v33  ;;  %v1299_v0 = vor.u32 %v1298_v36, %v1295_v50  ;;  %1006 = vrot.lane.b32.xlu1 %v967_v1, %s2914_s24  ;;  %v1426_v21 = vld [vmem:[#allocation2 + $0x48] sm:$0xf]  ;;  %v1136_v28 = vld [vmem:[#allocation2 + $0x40] sm:$0xf] }
 0x16d   : > { %v1254_v44 = vshll.u32 %v1186_v48, 16  ;;  %v1260_v16 = vshll.u32 %v1187_v52, 16  ;;  %1315 = vst.msk [vmem:[#allocation3 + $0x10] sm:$0xf] %vm440_vm0, %v1221_v57  ;;  %v1291_v43 = vsel %vm3124_vm11, %v1286_v62, %v1290_v30  ;;  %v1271_v63 = vor.u32 %v1270_v8, %v1267_v61  ;;  %1008 = vrot.lane.b32.xlu0 %v981_v5, %s2914_s24  ;;  %s3710_s24 = scalar_lea.hbm %s3782_s13, %s2588_s20 }
 0x16e   : > { %v1276_v13 = vrot.slane %v1274_v53, 5  ;;  %v1253_v2 = vrot.slane %v1251_v56, 4  ;;  %v1591_v17 = vshll.u32 %v1482_v22, 16  ;;  %1320 = vst.msk [vmem:[#allocation3 + $0x4c] sm:$0xf] %vm440_vm0, %v1291_v43  ;;  %v1300_v37 = vrot.slane %v1299_v0, 4 }
 0x16f   : > { %v1256_v23 = vrot.slane %v1254_v44, 5  ;;  %v1575_v6 = vrot.slane %v1574_v3, 4  ;;  %v1579_v24 = vrot.slane %v1577_v27, 5  ;;  %v1272_v12 = vrot.slane %v1271_v63, 4 }
 0x170   : > { %v1305_v40 = vsel %vm3124_vm11, %v1300_v37, %v1304_v55  ;;  %v1262_v18 = vrot.slane %v1260_v16, 5  ;;  %1449 = vrot.lane.b32.xlu1 %v1426_v21, %s2913_s23  ;;  %v1589_v59 = vrot.slane %v1588_v14, 4  ;;  %v1593_v4 = vrot.slane %v1591_v17, 5 }
 0x171   : > { %v1257_v29 = vor.u32 %v1256_v23, %v1253_v2  ;;  %1321 = vst.msk [vmem:[#allocation3 + $0x58] sm:$0xf] %vm440_vm0, %v1305_v40  ;;  %v1277_v25 = vsel %vm3124_vm11, %v1272_v12, %v1276_v13  ;;  %v1580_v26 = vsel %vm3124_vm11, %v1575_v6, %v1579_v24 }
 0x172   : > { %1319 = vst.msk [vmem:[#allocation3 + $0x40] sm:$0xf] %vm440_vm0, %v1277_v25  ;;  %1607 = vrot.lane.b32.xlu0 %v1580_v26, %s2915_s15  ;;  %v1594_v60 = vsel %vm3124_vm11, %v1589_v59, %v1593_v4 }
 0x173   : > { %v1258_v10 = vrot.slane %v1257_v29, 4 }
 0x174   : > { %1159 = vrot.lane.b32.xlu1 %v1136_v28, %s2915_s15 }
 0x175   : > { %v1263_v27 = vsel %vm3124_vm11, %v1258_v10, %v1262_v18 }
 0x176   : > { %1318 = vst.msk [vmem:[#allocation3 + $0x34] sm:$0xf] %vm440_vm0, %v1263_v27  ;;  %vm2917_vm0 = vmmov 0  }
 0x178   : > { %1609 = vrot.lane.b32.xlu1 %v1594_v60, %s2915_s15  ;;  %s431_s15 = sand.u32 1, %s2902_s26  }
 0x179   : > { %s2476_s16 = sshll.u32 %s431_s15, 6 }
 0x17a   : > { %s3697_s21 = scalar_lea.vmem [#allocation4], %s2476_s16  ;;  %s3728_s16 = scalar_lea.sflag [#allocation5], %s431_s15 }
 0x17b   : > { %s2410_s30 = sshll.u32 %s3697_s21, 4  ;;  %s3712_s30 = int_to_ptr.vmem [resolvable:$true] %s2410_s30 }
 0x17c   : > { %s2848_s20 = scalar_lea.vmem %s3712_s30, 1024 }
 0x17d   : > { %p2849_p11 = scmp.ne.s32.totalorder %s3712_s30, %s2848_s20 }
 0x17f   : > { %p2850_p12 = pnand %p2849_p11, %p3029_p5 }
 0x181   : > { %p2851_p13 = pneg %p2850_p12 }
 0x18c   : > { %v1438_v3 = vpop.permute.xlu1 %1437 }
 0x18d   : > { %v1150_v20 = vpop.permute.xlu0 %1149 }
 0x191   : > { %v1146_v32 = vpop.permute.xlu0 %1145 }
 0x192   : > { %v1152_v9 = vpop.permute.xlu1 %1151  ;;  %1170 = vst.msk [vmem:[#allocation3] sm:$0xf] %vm1169_vm1, %v1146_v32  ;;  %v2522_v32 = vld [vmem:[%s3775_s6] ss:$0 sm:$0xff] }
 0x195   : > { %v1440_v34 = vpop.permute.xlu0 %1439 }
 0x196   : > { %v1148_v33 = vpop.permute.xlu1 %1147 }
 0x199   : > { %v1436_v48 = vpop.permute.xlu0 %1435 }
 0x19a   : > { %v1103_v35 = vpop.permute.xlu1 %1102 }
 0x19e   : > { %v1387_v54 = vpop.permute.xlu1 %1386  ;;  %v1391_v15 = vpop.permute.xlu0 %1390 }
 0x19f   : > { %1410 = vst.msk [vmem:[#allocation3 + $0x4] sm:$0xf] %vm1020_vm12, %v1387_v54  ;;  %1412 = vst.msk [vmem:[#allocation3 + $0x1c] sm:$0xf] %vm1020_vm12, %v1391_v15 }
 0x1a0   : > { %1459 = vst.msk [vmem:[#allocation3 + $0x4] sm:$0xf] %vm1120_vm14, %v1436_v48  ;;  %1461 = vst.msk [vmem:[#allocation3 + $0x1c] sm:$0xf] %vm1120_vm14, %v1440_v34 }
 0x1a2   : > { %v1099_v19 = vpop.permute.xlu1 %1098  ;;  %v1105_v38 = vpop.permute.xlu0 %1104 }
 0x1a6   : > { %v1393_v30 = vpop.permute.xlu1 %1392  ;;  %v1101_v39 = vpop.permute.xlu0 %1100 }
 0x1a7   : > { %1413 = vst.msk [vmem:[#allocation3 + $0x28] sm:$0xf] %vm1020_vm12, %v1393_v30 }
 0x1aa   : > { %v1389_v31 = vpop.permute.xlu1 %1388  ;;  %v1154_v41 = vpop.permute.xlu0 %1153 }
 0x1ab   : > { %1411 = vst.msk [vmem:[#allocation3 + $0x10] sm:$0xf] %vm1020_vm12, %v1389_v31 }
 0x1ac   : > { %1460 = vst.msk [vmem:[#allocation3 + $0x10] sm:$0xf] %vm1120_vm14, %v1438_v3  ;;  %v2826_v3 = vld [vmem:[%s3776_s7] sm:$0xff]  }
 0x1ad   : > { %2700 = vmatprep.subr.bf16.mxu0 %v2826_v3 }
 0x1ae   : > { %v1446_v42 = vpop.permute.xlu1 %1445  ;;  %2701 = vmatpush3.bf16.msra.mxu0 %v2826_v3 }
 0x1af   : > { %v999_v45 = vpop.permute.xlu0 %998 }
 0x1b0   : > { %1022 = vst.msk [vmem:[#allocation3 + $0xc] sm:$0xf] %vm1020_vm12, %v999_v45 }
 0x1b1   : > { %1122 = vst.msk [vmem:[#allocation3 + $0xc] sm:$0xf] %vm1120_vm14, %v1099_v19 }
 0x1b2   : > { %1171 = vst.msk [vmem:[#allocation3 + $0xc] sm:$0xf] %vm1169_vm1, %v1148_v33  ;;  %v1598_v46 = vpop.permute.xlu1 %1597 }
 0x1b3   : > { %1620 = vst.msk [vmem:[#allocation3 + $0x10] sm:$0xf] %vm1169_vm1, %v1598_v46  ;;  %v1448_v47 = vpop.permute.xlu0 %1447 }
 0x1b6   : > { %v1003_v7 = vpop.permute.xlu1 %1002 }
 0x1b7   : > { %1024 = vst.msk [vmem:[#allocation3 + $0x24] sm:$0xf] %vm1020_vm12, %v1003_v7  ;;  %v1600_v49 = vpop.permute.xlu0 %1599 }
 0x1b8   : > { %1124 = vst.msk [vmem:[#allocation3 + $0x24] sm:$0xf] %vm1120_vm14, %v1103_v35 }
 0x1b9   : > { %1621 = vst.msk [vmem:[#allocation3 + $0x1c] sm:$0xf] %vm1169_vm1, %v1600_v49  ;;  %1173 = vst.msk [vmem:[#allocation3 + $0x24] sm:$0xf] %vm1169_vm1, %v1152_v9  ;;  %v2815_v56 = vld [vmem:[#allocation3] ss:$12 sps:$4 sm:$0xff]  }
 0x1ba   : > { %v1442_v50 = vpop.permute.xlu1 %1441 }
 0x1bb   : > { %1462 = vst.msk [vmem:[#allocation3 + $0x28] sm:$0xf] %vm1120_vm14, %v1442_v50  ;;  %v1005_v51 = vpop.permute.xlu0 %1004 }
 0x1bc   : > { %1025 = vst.msk [vmem:[#allocation3 + $0x30] sm:$0xf] %vm1020_vm12, %v1005_v51 }
 0x1bd   : > { %1125 = vst.msk [vmem:[#allocation3 + $0x30] sm:$0xf] %vm1120_vm14, %v1105_v38 }
 0x1be   : > { %1174 = vst.msk [vmem:[#allocation3 + $0x30] sm:$0xf] %vm1169_vm1, %v1154_v41  ;;  %v1156_v52 = vpop.permute.xlu1 %1155 }
 0x1bf   : > { %v1444_v11 = vpop.permute.xlu0 %1443 }
 0x1c2   : > { %v1111_v58 = vpop.permute.xlu1 %1110 }
 0x1c3   : > { %v1399_v36 = vpop.permute.xlu0 %1398 }
 0x1c4   : > { %1416 = vst.msk [vmem:[#allocation3 + $0x4c] sm:$0xf] %vm1020_vm12, %v1399_v36 }
 0x1c5   : > { %1465 = vst.msk [vmem:[#allocation3 + $0x4c] sm:$0xf] %vm1120_vm14, %v1448_v47 }
 0x1c6   : > { %v1107_v55 = vpop.permute.xlu1 %1106 }
 0x1c7   : > { %v1596_v61 = vpop.permute.xlu0 %1595 }
 0x1c8   : > { %1619 = vst.msk [vmem:[#allocation3 + $0x4] sm:$0xf] %vm1169_vm1, %v1596_v61 }
 0x1ca   : > { %v1401_v22 = vpop.permute.xlu1 %1400 }
 0x1cb   : > { %1417 = vst.msk [vmem:[#allocation3 + $0x58] sm:$0xf] %vm1020_vm12, %v1401_v22  ;;  %v1001_v62 = vpop.permute.xlu0 %1000 }
 0x1cc   : > { %1023 = vst.msk [vmem:[#allocation3 + $0x18] sm:$0xf] %vm1020_vm12, %v1001_v62 }
 0x1cd   : > { %1123 = vst.msk [vmem:[#allocation3 + $0x18] sm:$0xf] %vm1120_vm14, %v1101_v39 }
 0x1ce   : > { %1172 = vst.msk [vmem:[#allocation3 + $0x18] sm:$0xf] %vm1169_vm1, %v1150_v20  ;;  %v1397_v8 = vpop.permute.xlu1 %1396  ;;  %v2827_v20 = vld [vmem:[%s3776_s7 + $0x8] sm:$0xff]  }
 0x1cf   : > { %1415 = vst.msk [vmem:[#allocation3 + $0x40] sm:$0xf] %vm1020_vm12, %v1397_v8  ;;  %v1395_v53 = vpop.permute.xlu0 %1394  ;;  %v2817_v57 = vld [vmem:[#allocation3 + $0x4] ss:$12 sps:$4 sm:$0xff]   ;;  %2702 = vmatprep.subr.bf16.mxu0 %v2827_v20 }
 0x1d0   : > { %1464 = vst.msk [vmem:[#allocation3 + $0x40] sm:$0xf] %vm1120_vm14, %v1446_v42  ;;  %1979 = vmatprep.mubr.bf16.mxu1 %v2817_v57  ;;  %2703 = vmatpush3.bf16.msra.mxu0 %v2827_v20 }
 0x1d1   : > { %1414 = vst.msk [vmem:[#allocation3 + $0x34] sm:$0xf] %vm1020_vm12, %v1395_v53  ;;  %1980 = vmatmul.mubr.bf16.vlgmr.msra.gmra.mrb[0].mxu1 %v2815_v56 }
 0x1d2   : > { %1463 = vst.msk [vmem:[#allocation3 + $0x34] sm:$0xf] %vm1120_vm14, %v1444_v11  ;;  %v1606_v0 = vpop.permute.xlu1 %1605 }
 0x1d3   : > { %1624 = vst.msk [vmem:[#allocation3 + $0x40] sm:$0xf] %vm1169_vm1, %v1606_v0  ;;  %v1109_v44 = vpop.permute.xlu0 %1108 }
 0x1d5   : > { %v1711_v37 = vld [vmem:[#allocation3 + $0x18] sm:$0xff] }
 0x1d6   : > { %v1011_v16 = vpop.permute.xlu1 %1010 }
 0x1d7   : > { %1028 = vst.msk [vmem:[#allocation3 + $0x54] sm:$0xf] %vm1020_vm12, %v1011_v16  ;;  %v1158_v43 = vpop.permute.xlu0 %1157 }
 0x1d8   : > { %1128 = vst.msk [vmem:[#allocation3 + $0x54] sm:$0xf] %vm1120_vm14, %v1111_v58 }
 0x1da   : > { %v1602_v63 = vpop.permute.xlu1 %1601 }
 0x1db   : > { %1622 = vst.msk [vmem:[#allocation3 + $0x28] sm:$0xf] %vm1169_vm1, %v1602_v63  ;;  %v1604_v13 = vpop.permute.xlu0 %1603 }
 0x1dc   : > { %1623 = vst.msk [vmem:[#allocation3 + $0x34] sm:$0xf] %vm1169_vm1, %v1604_v13 }
 0x1de   : > { %v1007_v2 = vpop.permute.xlu1 %1006 }
 0x1df   : > { %1026 = vst.msk [vmem:[#allocation3 + $0x3c] sm:$0xf] %vm1020_vm12, %v1007_v2  ;;  %v1009_v1 = vpop.permute.xlu0 %1008 }
 0x1e0   : > { %1126 = vst.msk [vmem:[#allocation3 + $0x3c] sm:$0xf] %vm1120_vm14, %v1107_v55 }
 0x1e1   : > { %1027 = vst.msk [vmem:[#allocation3 + $0x48] sm:$0xf] %vm1020_vm12, %v1009_v1 }
 0x1e2   : > { %1175 = vst.msk [vmem:[#allocation3 + $0x3c] sm:$0xf] %vm1169_vm1, %v1156_v52  ;;  %v1450_v17 = vpop.permute.xlu1 %1449  ;;  %v1713_v23 = vld [vmem:[#allocation3 + $0x24] sm:$0xff] }
 0x1e3   : > { %1127 = vst.msk [vmem:[#allocation3 + $0x48] sm:$0xf] %vm1120_vm14, %v1109_v44  ;;  %v2818_v5 = vld [vmem:[#allocation3 + $0x1c] ss:$12 sps:$4 sm:$0xff]   ;;  %1466 = vst.msk [vmem:[#allocation3 + $0x58] sm:$0xf] %vm1120_vm14, %v1450_v17  ;;  %v2526_v24 = vcombine.low %v1711_v37, %v1713_v23 }
 0x1e4   : > { %1176 = vst.msk [vmem:[#allocation3 + $0x48] sm:$0xf] %vm1169_vm1, %v1158_v43  ;;  %v1608_v6 = vpop.permute.xlu0 %1607  ;;  %1987 = vmatprep.mubr.bf16.mxu1 %v2818_v5  ;;  %v2820_v21 = vld [vmem:[#allocation3 + $0x34] ss:$12 sps:$4 sm:$0xff]  }
 0x1e5   : > { %1625 = vst.msk [vmem:[#allocation3 + $0x4c] sm:$0xf] %vm1169_vm1, %v1608_v6  ;;  %1988 = vmatmul.mubr.bf16.gmra.mrb[4].mxu1 %v2526_v24 }
 0x1e6   : > { %v1160_v12 = vpop.permute.xlu1 %1159  ;;  %1995 = vmatprep.mubr.bf16.mxu1 %v2820_v21 }
 0x1e7   : > { %1177 = vst.msk [vmem:[#allocation3 + $0x54] sm:$0xf] %vm1169_vm1, %v1160_v12 }
 0x1e9   : > { %v2822_v40 = vld [vmem:[#allocation3 + $0x30] ss:$12 sps:$4 sm:$0xff]  }
 0x1ea   : > { %v1610_v14 = vpop.permute.xlu1 %1609 }
 0x1eb   : > { %1626 = vst.msk [vmem:[#allocation3 + $0x58] sm:$0xf] %vm1169_vm1, %v1610_v14 }
 0x1ed   : > { %1996 = vmatmul.mubr.bf16.gmra.mrb[8].mxu1 %v2822_v40 }
 0x1ee   : > { %v2825_v18 = vld [vmem:[#allocation3 + $0x48] ss:$12 sps:$4 sm:$0xff]  }
 0x1f2   : > { %v2823_v29 = vld [vmem:[#allocation3 + $0x4c] ss:$12 sps:$4 sm:$0xff]  }
 0x1f3   : > { %2003 = vmatprep.mubr.bf16.mxu1 %v2823_v29 }
 0x1f5   : > { %2004 = vmatmul.mubr.bf16.gmra.mrb[12].mxu1 %v2825_v18  ;;  %v2828_v18 = vld [vmem:[%s3778_s9] sm:$0xff]  }
 0x204   : > { %v2694_v25 = vpop.f32.mrb[8].mxu0 }
 0x205   : > { %v2046_v10 = vpop.f32.mrb[9].mxu0 }
 0x206   : > { %v2695_v26 = vpop.f32.mrb[10].mxu0 }
 0x207   : > { %v2049_v59 = vpop.f32.mrb[11].mxu0 }
 0x214   : > { %v2698_v4 = vpop.f32.mrb[12].mxu0 }
 0x215   : > { %v2062_v27 = vpop.f32.mrb[13].mxu0 }
 0x216   : > { %v2699_v28 = vpop.f32.mrb[14].mxu0 }
 0x217   : > { %v2065_v60 = vpop.f32.mrb[15].mxu0 }
 0x2a4   : > { %v2617_v9 = vpop.f32.mrb[0].mxu1 }
 0x2a5   : > { %v2618_v33 = vpop.f32.mrb[1].mxu1 }
 0x2a6   : > { %v2619_v34 = vadd.f32 %v2618_v33, %v2617_v9  ;;  %v2620_v35 = vpop.f32.mrb[2].mxu1  ;;  %v2557_v33 = vld [vmem:[%s3777_s8] ss:$0 sm:$0xff] }
 0x2a7   : > { %v2621_v48 = vpop.f32.mrb[3].mxu1 }
 0x2a8   : > { %v1982_v54 = vadd.f32 %v2619_v34, %v2522_v32  ;;  %v2622_v15 = vadd.f32 %v2621_v48, %v2620_v35 }
 0x2aa   : > { %v2047_v19 = vadd.f32 %v2046_v10, %v1982_v54  ;;  %v1985_v38 = vadd.f32 %v2622_v15, %v2522_v32  ;;  %v2829_v10 = vld [vmem:[%s3778_s9 + $0x8] sm:$0xff]  }
 0x2ac   : > { %v2050_v30 = vadd.f32 %v2049_v59, %v1985_v38  ;;  %v2077_v39 = vmax.f32 %v2047_v19, 0.0  ;;  %v2831_v59 = vld [vmem:[%s3778_s9 + $0x18] sm:$0xff]  }
 0x2ae   : > { %v2078_v31 = vmax.f32 %v2050_v30, 0.0 }
 0x2b0   : > { %v2085_v41 = vpack.c.bf16 %v2078_v31, %v2077_v39 }
 0x2b2   : > { %2704 = vmatprep.mubr.msk.bf16.mxu0 %vm1934_vm15, %v2085_v41 }
 0x2b8   : > { %v2623_v42 = vpop.f32.mrb[4].mxu1 }
 0x2b9   : > { %v2624_v45 = vpop.f32.mrb[5].mxu1 }
 0x2ba   : > { %v2625_v46 = vadd.f32 %v2624_v45, %v2623_v42  ;;  %v2626_v47 = vpop.f32.mrb[6].mxu1 }
 0x2bb   : > { %v2627_v7 = vpop.f32.mrb[7].mxu1 }
 0x2bc   : > { %v1990_v49 = vadd.f32 %v2625_v46, %v2522_v32  ;;  %v2628_v50 = vadd.f32 %v2627_v7, %v2626_v47 }
 0x2be   : > { %v2055_v51 = vadd.f32 %v2694_v25, %v1990_v49  ;;  %v1993_v52 = vadd.f32 %v2628_v50, %v2522_v32  ;;  %v2916_v25 = vmov 0.0  }
 0x2bf   : > { %2712 = vmatprep.subr.bf16.mxu1 %v2916_v25  ;;  %2728 = vmatprep.mubr.msk.bf16.mxu1 %vm2917_vm0, %v2916_v25 }
 0x2c0   : > { %v2058_v11 = vadd.f32 %v2695_v26, %v1993_v52  ;;  %v2629_v58 = vpop.f32.mrb[8].mxu1  ;;  %v2079_v55 = vmax.f32 %v2055_v51, 0.0  ;;  %2713 = vmatpush3.bf16.msra.mxu1 %v2828_v18  ;;  %v2830_v26 = vld [vmem:[%s3778_s9 + $0x10] sm:$0xff]  }
 0x2c1   : > { %v2630_v36 = vpop.f32.mrb[9].mxu1  ;;  %2714 = vmatprep.subr.bf16.mxu1 %v2916_v25 }
 0x2c2   : > { %v2080_v61 = vmax.f32 %v2058_v11, 0.0  ;;  %v2631_v22 = vadd.f32 %v2630_v36, %v2629_v58  ;;  %v2632_v62 = vpop.f32.mrb[10].mxu1 }
 0x2c3   : > { %v2633_v8 = vpop.f32.mrb[11].mxu1 }
 0x2c4   : > { %v2086_v53 = vpack.c.bf16 %v2080_v61, %v2079_v55  ;;  %v1998_v56 = vadd.f32 %v2631_v22, %v2522_v32  ;;  %v2634_v57 = vadd.f32 %v2633_v8, %v2632_v62  ;;  %2715 = vmatpush3.bf16.msra.mxu1 %v2829_v10  ;;  %v2312_v22 = vld [vmem:[%s3780_s11] sm:$0xf] }
 0x2c5   : > { %2716 = vmatprep.subr.bf16.mxu1 %v2916_v25 }
 0x2c6   : > { %v2063_v0 = vadd.f32 %v2062_v27, %v1998_v56  ;;  %v2001_v44 = vadd.f32 %v2634_v57, %v2522_v32  ;;  %2705 = vmatmul.mubr.msk.bf16.vlgmr.msra.gmra.mrb[16].mxu0 %vm1934_vm15, %v2086_v53  ;;  %v2833_v27 = vld [vmem:[%s3778_s9 + $0x28] sm:$0xff]   ;;  %v2320_v53 = vsel %vm2318_vm2, %v2312_v22, 0  ;;  %v2221_v56 = vld [vmem:[%s3779_s10] sm:$0x1] }
 0x2c8   : > { %v2066_v16 = vadd.f32 %v2065_v60, %v2001_v44  ;;  %v2635_v43 = vpop.f32.mrb[12].mxu1  ;;  %v2081_v13 = vmax.f32 %v2063_v0, 0.0  ;;  %2717 = vmatpush3.bf16.msra.mxu1 %v2830_v26  ;;  %v2835_v60 = vld [vmem:[%s3778_s9 + $0x38] sm:$0xff]  }
 0x2c9   : > { %v2636_v63 = vpop.f32.mrb[13].mxu1  ;;  %2718 = vmatprep.subr.bf16.mxu1 %v2916_v25 }
 0x2ca   : > { %v2082_v2 = vmax.f32 %v2066_v16, 0.0  ;;  %v2637_v1 = vadd.f32 %v2636_v63, %v2635_v43  ;;  %v2638_v17 = vpop.f32.mrb[14].mxu1 }
 0x2cb   : > { %v2639_v37 = vpop.f32.mrb[15].mxu1 }
 0x2cc   : > { %v2087_v23 = vpack.c.bf16 %v2082_v2, %v2081_v13  ;;  %v2006_v5 = vadd.f32 %v2637_v1, %v2522_v32  ;;  %v2640_v6 = vadd.f32 %v2639_v37, %v2638_v17  ;;  %2719 = vmatpush3.bf16.msra.mxu1 %v2831_v59  ;;  %v2313_v2 = vld [vmem:[%s3781_s12] sm:$0x1] }
 0x2cd   : > { %2720 = vmatprep.subr.bf16.mxu1 %v2916_v25 }
 0x2ce   : > { %v2071_v24 = vadd.f32 %v2698_v4, %v2006_v5  ;;  %v2009_v12 = vadd.f32 %v2640_v6, %v2522_v32  ;;  %2708 = vmatprep.mubr.msk.bf16.mxu0 %vm1934_vm15, %v2087_v23  ;;  %v2832_v4 = vld [vmem:[%s3778_s9 + $0x20] sm:$0xff]  }
 0x2d0   : > { %v2074_v21 = vadd.f32 %v2699_v28, %v2009_v12  ;;  %v2083_v14 = vmax.f32 %v2071_v24, 0.0  ;;  %2721 = vmatpush3.bf16.msra.mxu1 %v2832_v4  ;;  %v2834_v28 = vld [vmem:[%s3778_s9 + $0x30] sm:$0xff]  }
 0x2d1   : > { %2722 = vmatprep.subr.bf16.mxu1 %v2916_v25 }
 0x2d2   : > { %v2084_v40 = vmax.f32 %v2074_v21, 0.0  ;;  %v2368_v21 = vlaneseq }
 0x2d4   : > { %v2088_v29 = vpack.c.bf16 %v2084_v40, %v2083_v14  ;;  %2723 = vmatpush3.bf16.msra.mxu1 %v2833_v27  ;;  %v2369_v14 = vshrl.u32 %v2368_v21, 7 }
 0x2d5   : > { %2724 = vmatprep.subr.bf16.mxu1 %v2916_v25 }
 0x2d6   : > { %2709 = vmatmul.mubr.msk.bf16.gmra.mrb[20].mxu0 %vm1934_vm15, %v2088_v29  ;;  %v2370_v40 = vsub.s32 0, %v2369_v14 }
 0x2d8   : > { %2725 = vmatpush3.bf16.msra.mxu1 %v2834_v28 }
 0x2d9   : > { %2726 = vmatprep.subr.bf16.mxu1 %v2916_v25 }
 0x2dc   : > { %2727 = vmatpush3.bf16.msra.mxu1 %v2835_v60 }
 0x2dd   : > { %2732 = vmatprep.subr.bf16.mxu1 %v2916_v25 }
 0x399   : > { %v2706_v3 = vpop.f32.mrb[16].mxu0 }
 0x39a   : > { %v2158_v20 = vpop.f32.mrb[17].mxu0  ;;  %v3679_v54 = vadd.f32 %v2706_v3, %v2557_v33  ;;  %v2840_v3 = vld [vmem:[%s3055_s22] sm:$0xff] }
 0x39b   : > { %v2707_v9 = vpop.f32.mrb[18].mxu0  ;;  %v3675_v35 = vadd.f32 %v2557_v33, %v2158_v20 }
 0x39c   : > { %v2161_v32 = vpop.f32.mrb[19].mxu0  ;;  %v2170_v19 = vadd.f32 %v2707_v9, %v2557_v33  ;;  %v2841_v9 = vld [vmem:[%s3055_s22 + $0x8] sm:$0xff] }
 0x39d   : > { %v3673_v34 = vadd.f32 %v2557_v33, %v2161_v32 }
 0x39f   : > { %v2189_v48 = vadd.f32 %v3673_v34, %v3675_v35 }
 0x3a1   : > { %v2190_v15 = vadd.f32 %v2189_v48, %v3679_v54 }
 0x3a3   : > { %v2191_v31 = vadd.f32 %v2190_v15, %v2170_v19 }
 0x3a9   : > { %v2710_v38 = vpop.f32.mrb[20].mxu0 }
 0x3aa   : > { %v2174_v30 = vpop.f32.mrb[21].mxu0  ;;  %v2183_v47 = vadd.f32 %v2710_v38, %v2557_v33 }
 0x3ab   : > { %v2175_v39 = vadd.f32 %v2557_v33, %v2174_v30  ;;  %v2711_v41 = vpop.f32.mrb[22].mxu0  ;;  %v2846_v30 = vld [vmem:[%s3055_s22 + $0x30] sm:$0xff] }
 0x3ac   : > { %v2177_v42 = vpop.f32.mrb[23].mxu0  ;;  %v2186_v49 = vadd.f32 %v2711_v41, %v2557_v33 }
 0x3ad   : > { %v2192_v45 = vadd.f32 %v2191_v31, %v2175_v39  ;;  %v2178_v46 = vadd.f32 %v2557_v33, %v2177_v42  ;;  %v2842_v33 = vld [vmem:[%s3055_s22 + $0x10] sm:$0xff]  ;;  %v2847_v31 = vld [vmem:[%s3055_s22 + $0x38] sm:$0xff] }
 0x3af   : > { %v2193_v7 = vadd.f32 %v2192_v45, %v2178_v46 }
 0x3b1   : > { %v2194_v50 = vadd.f32 %v2193_v7, %v2183_v47 }
 0x3b3   : > { %v2195_v51 = vadd.f32 %v2194_v50, %v2186_v49 }
 0x3b5   : > { %v2196_v52 = vrot.slane %v2195_v51, 4 }
 0x3b7   : > { %v2197_v11 = vadd.f32 %v2196_v52, %v2195_v51 }
 0x3b9   : > { %v2198_v58 = vrot.slane %v2197_v11, 2 }
 0x3bb   : > { %v2199_v36 = vadd.f32 %v2198_v58, %v2197_v11 }
 0x3bd   : > { %v2200_v55 = vrot.slane %v2199_v36, 1 }
 0x3bf   : > { %v2201_v61 = vadd.f32 %v2200_v55, %v2199_v36 }
 0x3c1   : > { %v2203_v62 = vmul.f32 0.015625, %v2201_v61 }
 0x3c3   : > { %v2204_v8 = vpack.c.bf16 %v2203_v62, %v2203_v62 }
 0x3c5   : > { %2729 = vmatmul.mubr.bf16.vlgmr.msra.gmra.mrb[16].mxu1 %v2204_v8 }
 0x3c6   : > { %2733 = vmatpush3.bf16.msra.mxu1 %v2320_v53  ;;  %2734 = vmatprep.mubr.msk.bf16.mxu1 %vm2917_vm0, %v2916_v25 }
 0x498   : > { %v2304_v57 = vpop.f32.mrb[16].mxu1 }
 0x499   : > { %v2305_v0 = vadd.f32 %v2304_v57, %v2221_v56  ;;  %v2730_v44 = vpop.f32.mrb[17].mxu1 }
 0x49a   : > { %v2307_v16 = vpop.f32.mrb[18].mxu1 }
 0x49b   : > { %v2310_v43 = vmax.f32 %v2305_v0, 0.0  ;;  %v2731_v63 = vpop.f32.mrb[19].mxu1 }
 0x49d   : > { %v2311_v13 = vpack.c.bf16 %v2310_v43, %v2310_v43 }
 0x49f   : > { %2735 = vmatmul.mubr.msk.bf16.vlgmr.msra.gmra.mrb[20].mxu1 %vm2314_vm3, %v2311_v13 }
 0x572   : > { %v2356_v1 = vpop.f32.mrb[20].mxu1 }
 0x573   : > { %v2357_v17 = vadd.f32 %v2356_v1, %v2313_v2  ;;  %v2736_v37 = vpop.f32.mrb[21].mxu1 }
 0x574   : > { %v2359_v23 = vpop.f32.mrb[22].mxu1 }
 0x575   : > { %v2573_v5 = vmul.f32 -1.442695, %v2357_v17  ;;  %v2737_v6 = vpop.f32.mrb[23].mxu1 }
 0x577   : > { %2836 = vpow2.f32 %v2573_v5 }
 0x581   : > { %v2837_v24 = vpop.eup %2836 }
 0x582   : > { %v2365_v12 = vadd.f32 1.0, %v2837_v24 }
 0x584   : > { %2838 = vrcp.f32 %v2365_v12 }
 0x58e   : > { %v2839_v29 = vpop.eup %2838 }
 0x58f   : > { %v2371_v18 = vrot.slane %v2839_v29, %v2370_v40 }
 0x591   : > { %v2372_v25 = vmul.f32 %v2371_v18, %v3675_v35  ;;  %v2373_v10 = vmul.f32 %v2371_v18, %v3673_v34  ;;  %v2374_v26 = vmul.f32 %v2371_v18, %v3679_v54  ;;  %v2375_v59 = vmul.f32 %v2371_v18, %v2170_v19  ;;  %v2843_v35 = vld [vmem:[%s3055_s22 + $0x18] sm:$0xff]  ;;  %v2844_v54 = vld [vmem:[%s3055_s22 + $0x20] sm:$0xff]  ;;  %v2845_v19 = vld [vmem:[%s3055_s22 + $0x28] sm:$0xff]  ;;  %s2852_s22 = sshll.u32 %s2918_s29, 4  ;;  %s2853_s22 = int_to_ptr.vmem [resolvable:$false] %s2852_s22 }
 0x592   : > { %v2376_v4 = vmul.f32 %v2371_v18, %v2175_v39  ;;  %v2377_v27 = vmul.f32 %v2371_v18, %v2178_v46  ;;  %v2378_v28 = vmul.f32 %v2371_v18, %v2183_v47  ;;  %v2379_v60 = vmul.f32 %v2371_v18, %v2186_v49  ;;  %s2854_s23 = scalar_lea.vmem %s2853_s22, 2048  ;;  %p2855_p0 = scmp.lt.s32.totalorder %s3712_s30, %s2853_s22 }
 0x593   : > { %v2380_v20 = vadd.f32 %v2840_v3, %v2372_v25  ;;  %v2381_v32 = vadd.f32 %v2841_v9, %v2373_v10  ;;  %v2382_v34 = vadd.f32 %v2842_v33, %v2374_v26  ;;  %v2383_v48 = vadd.f32 %v2843_v35, %v2375_v59  ;;  %p2856_p1 = scmp.lt.s32.totalorder %s2854_s23, %s2848_s20 }
 0x594   : > { %v2384_v15 = vadd.f32 %v2844_v54, %v2376_v4  ;;  %v2385_v38 = vadd.f32 %v2845_v19, %v2377_v27  ;;  %v2386_v39 = vadd.f32 %v2846_v30, %v2378_v28  ;;  %v2387_v41 = vadd.f32 %v2847_v31, %v2379_v60 }
 0x595   : > { %2388 = vst [vmem:[%s3697_s21] sm:$0xff] %v2380_v20  ;;  %2389 = vst [vmem:[%s3697_s21 + $0x8] sm:$0xff] %v2381_v32  ;;  %p2857_p2 = por %p2856_p1, %p2855_p0 }
 0x596   : > { %2390 = vst [vmem:[%s3697_s21 + $0x10] sm:$0xff] %v2382_v34  ;;  %2391 = vst [vmem:[%s3697_s21 + $0x18] sm:$0xff] %v2383_v48 }
 0x597   : > { %2392 = vst [vmem:[%s3697_s21 + $0x20] sm:$0xff] %v2384_v15  ;;  %2393 = vst [vmem:[%s3697_s21 + $0x28] sm:$0xff] %v2385_v38  ;;  %p2858_p3 = pnand %p2857_p2, %p2851_p13 }
 0x598   : > { %2394 = vst [vmem:[%s3697_s21 + $0x30] sm:$0xff] %v2386_v39  ;;  %2395 = vst [vmem:[%s3697_s21 + $0x38] sm:$0xff] %v2387_v41 }
 0x599   : > { %2861 = shalt.err (!%p2858_p3)
}
 0x59a   : > { %s2862_s15 = scalar_lea.hbm %s3710_s24, 1024  ;;  %s2866_s29 = scalar_lea.hbm %s3782_s13, 2048 }
 0x59b   : > { %p2863_p4 = scmp.ne.s32.totalorder %s3710_s24, %s2862_s15  ;;  %p2867_p9 = scmp.lt.u32.totalorder %s3710_s24, %s3782_s13 }
 0x59c   : > { %p2868_p10 = scmp.lt.u32.totalorder %s2866_s29, %s2862_s15  ;;  %p2870_p12 = scmp.lt.u32.totalorder %s2862_s15, %s3710_s24 }
 0x59d   : > { %p2864_p7 = pnand %p2863_p4, %p3029_p5 }
 0x59e   : > { %p2869_p11 = por %p2868_p10, %p2867_p9 }
 0x59f   : > { %p2865_p8 = pneg %p2864_p7 }
 0x5a0   : > { %p2871_p13 = por %p2870_p12, %p2869_p11 }
 0x5a2   : > { %p2872_p0 = pnand %p2871_p13, %p2865_p8 }
 0x5a4   : > { %2875 = shalt.err (!%p2872_p0)
}
 0x5a5   : > { %s2919_s20 = smov 128   ;;  %s2920_s23 = smov 8  }
 0x5a6   : > { %2738 = dma.vmem_to_hbm [thread:$0]  (%p3029_p5), %s3712_s30, 1024, %s3710_s24, %s3728_s16, %s2919_s20, %s2919_s20, %s2920_s23  }
 0x5a7 PF: > { %p2744_p1 = scmp.ge.s32.totalorder %s2910_s28, 2  ;;  %s2425_s0 = sand.u32 1, %s2898_s25  }
 0x5a8   : > { %s2426_s1 = scalar_lea.sflag [#allocation5], %s2425_s0 }
 0x5a9   : > { %p2741_p2 = pnand %p2744_p1, %p3033_p6 }
 0x5ab   : > { %2893 = dma.done.wait (!%p2741_p2), %s2426_s1, 1024  }
 0x5ac   : > { %2895 = vsyncadd (!%p2741_p2), %s2426_s1, 4294966272  ;;  %p23_p3 = scmp.ge.s32.totalorder %s3016_s14, 4   ;;  %s3799_s25 = smov %s2902_s26 }
 0x5ad   : > { %s3800_s26 = smov %s2906_s27  ;;  %s3801_s27 = smov %s3027_s17 }
 0x5ae   : > { %s3802_s28 = smov %s3016_s14  ;;  %25 = sbr.rel (!%p23_p3) target bundleno = 6 (0x6), region = 110 }
 0x5b5   :  { %2431 = vsyncpa [#allocation5], 1 }
 0x5b6   :  { %2433 = vsyncpa [#allocation5 + $0x1], 1 }

</bundles_post_ra>
